<compile_context>
chip_gen: v7x
topology: tpu7x:2x2x1
jax: 0.10.0
libtpu: 0.0.40
codegen_flags: <defaults>
</compile_context>

<pallas_src>
import functools

import numpy as np

import jax
import jax.numpy as jnp
from jax.experimental import pallas as pl
from jax.experimental.pallas import tpu as pltpu

NEG_SLOPE = 0.2
BN_EPS = 1e-5
DF_DIM = 8           # synthetic cfg.GAN.DF_DIM
IMSIZE = 32          # synthetic imsize (must be divisible by 16)
CIN0_PAD = 4         # pad the 3 RGB channels to 4 -> 128-lane input slab

_LAYER_CFG = [
    # node_d_0 (custom_con2d defaults: 4x4 kernel, stride 2, TF-SAME padding)
    dict(cin=3,          cout=DF_DIM,     k=4, s=2, bn=False, leaky=True),
    dict(cin=DF_DIM,     cout=DF_DIM * 2, k=4, s=2, bn=True,  leaky=True),
    dict(cin=DF_DIM * 2, cout=DF_DIM * 4, k=4, s=2, bn=True,  leaky=False),
    dict(cin=DF_DIM * 4, cout=DF_DIM * 8, k=4, s=2, bn=True,  leaky=False),
    # node_d_1 (stride 1)
    dict(cin=DF_DIM * 8, cout=DF_DIM * 2, k=1, s=1, bn=True,  leaky=True),
    dict(cin=DF_DIM * 2, cout=DF_DIM * 2, k=3, s=1, bn=True,  leaky=True),
    dict(cin=DF_DIM * 2, cout=DF_DIM * 8, k=3, s=1, bn=True,  leaky=False),
]


# ----------------------------------------------------------------------------
# The single fused Pallas kernel
# ----------------------------------------------------------------------------
def _leaky(x):
    return jnp.where(x > 0.0, x, NEG_SLOPE * x)


def _d_image_encoder_kernel(x_ref,
                            r0, m0, b0,
                            r1, m1, bgb1,
                            r2, m2, bgb2,
                            r3, m3, bgb3,
                            m5, bgb5,
                            r33, m6, bgb6,
                            m7, bgb7,
                            o_ref, *, bn0, bn1):
    """Whole d_image_encoder forward in one VMEM-resident invocation.

    Activation layout everywhere: rows = (n, h), lanes = (w, c) with 128 lanes.
    bn0: ((wo, cout, inv_m) for node_d_0 layers 1..3); bn1: same for node_d_1.
    """

    def conv(x, r_ref, m_ref, bias, ntaps):
        # row-tap gather (tiny 0/1 matmuls) -> lane-concat -> one lane-dense matmul
        if ntaps > 1:
            x = jnp.concatenate(
                [jnp.dot(r_ref[t], x, preferred_element_type=jnp.float32)
                 for t in range(ntaps)],
                axis=-1)
        return jnp.dot(x.astype(jnp.bfloat16), m_ref[...],
                       preferred_element_type=jnp.float32) + bias

    def bn(y, bgb_ref, cfg_t):
        # Train-mode BN over (rows, wo*cout); two-pass variance; per-channel
        # reduce + broadcast across the `wo` lane groups via XLU roll-adds.
        wo, cout, inv_m = cfg_t

        def lane_allreduce(v):
            w = wo
            while w > 1:
                w //= 2
                v = v + pltpu.roll(v, shift=w * cout, axis=1)
            return v

        mean = lane_allreduce(jnp.sum(y, axis=0, keepdims=True)) * inv_m
        d = y - mean                                            # two-pass variance
        var = lane_allreduce(jnp.sum(d * d, axis=0, keepdims=True)) * inv_m
        scale = bgb_ref[1:2, :] * jax.lax.rsqrt(var + BN_EPS)   # gamma * rsqrt (EUP)
        return d * scale + bgb_ref[2:3, :]                      # + beta

    x = x_ref[...]

    # ---- node_d_0 -----------------------------------------------------------
    h = _leaky(conv(x, r0, m0, b0[...], 4))                          # conv0 + LReLU
    h = _leaky(bn(conv(h, r1, m1, bgb1[0:1, :], 4), bgb1, bn0[0]))   # conv1 + BN + LReLU
    h = bn(conv(h, r2, m2, bgb2[0:1, :], 4), bgb2, bn0[1])           # conv2 + BN
    n0 = bn(conv(h, r3, m3, bgb3[0:1, :], 4), bgb3, bn0[2])          # conv3 + BN

    # ---- node_d_1 (channels zero-padded to 8*df so lanes stay 128-wide) -----
    g = _leaky(bn(conv(n0, None, m5, bgb5[0:1, :], 1), bgb5, bn1))   # 1x1 + BN + LReLU
    g = _leaky(bn(conv(g, r33, m6, bgb6[0:1, :], 3), bgb6, bn1))     # 3x3 + BN + LReLU
    n1 = bn(conv(g, r33, m7, bgb7[0:1, :], 3), bgb7, bn1)            # 3x3 + BN

    # ---- residual + final activation ----------------------------------------
    o_ref[...] = _leaky(n0 + n1)


# ----------------------------------------------------------------------------
# One-time host-side parameter repack (outside jit)
# ----------------------------------------------------------------------------
def _same_pad_left(size, k, stride):
    out = -(-size // stride)
    total = max((out - 1) * stride + k - size, 0)
    return total // 2


def _conv_mats(wt, H, W, stride, pad, n_batch, cin_pad, cout_pad):
    """Row-tap selection matrices R (k, N*Ho, N*H) and per-tap dense weight
    M (k*W*cin_pad, Wo*cout_pad) for a SAME-padded conv in the (N*H, W*C) layout."""
    cout, cin, kh, kw = wt.shape
    Ho = -(-H // stride)
    Wo = -(-W // stride)
    R = np.zeros((kh, n_batch * Ho, n_batch * H), np.float32)
    for di in range(kh):
        for b in range(n_batch):
            for oh in range(Ho):
                ih = stride * oh - pad + di
                if 0 <= ih < H:
                    R[di, b * Ho + oh, b * H + ih] = 1.0
    M = np.zeros((kh * W * cin_pad, Wo * cout_pad), np.float32)
    for di in range(kh):
        for dj in range(kw):
            for ow in range(Wo):
                iw = stride * ow - pad + dj
                if 0 <= iw < W:
                    rr = di * W * cin_pad + iw * cin_pad
                    cc = ow * cout_pad
                    M[rr:rr + cin, cc:cc + cout] = wt[:, :, di, dj].T
    return R, M, Ho, Wo


def _lane_tile(vec, reps, width, fill):
    v = np.full((width,), fill, np.float32)
    v[:vec.shape[0]] = vec
    return np.tile(v, reps)[None, :]            # (1, reps*width)


def init_params(key):
    params = []
    for cfg_l in _LAYER_CFG:
        key, kw_, kb_, kg_, kbt_ = jax.random.split(key, 5)
        cin, cout, k = cfg_l["cin"], cfg_l["cout"], cfg_l["k"]
        fan_in = cin * k * k
        p = {
            "w": jax.random.normal(kw_, (cout, cin, k, k), jnp.float32)
                 * (1.0 / jnp.sqrt(fan_in)),
            "b": jax.random.normal(kb_, (cout,), jnp.float32) * 0.01,
        }
        if cfg_l["bn"]:
            p["gamma"] = 1.0 + 0.1 * jax.random.normal(kg_, (cout,), jnp.float32)
            p["beta"] = 0.1 * jax.random.normal(kbt_, (cout,), jnp.float32)
        params.append(p)
    return params


def prepare_params(params, imsize, n_batch):
    s16 = imsize // 16
    c_big = DF_DIM * 8
    args = []

    # node_d_0: compact per-row-tap weights (NOT the densified spatial matmul form).
    in_sizes = [imsize, imsize // 2, imsize // 4, imsize // 8]
    for li in range(4):
        cfg_l, p = _LAYER_CFG[li], params[li]
        H = in_sizes[li]
        cin_pad = CIN0_PAD if li == 0 else cfg_l["cin"]
        R, M, Ho, Wo = _conv_mats(np.asarray(p["w"]), H, H, cfg_l["s"],
                                  _same_pad_left(H, cfg_l["k"], cfg_l["s"]),
                                  n_batch, cin_pad, cfg_l["cout"])
        assert Wo * cfg_l["cout"] == 128 and (Wo & (Wo - 1)) == 0, \
            "lane-dense / power-of-two-W invariant violated (IMSIZE, DF_DIM combo)"
        args.append(jnp.asarray(R, jnp.float32))
        args.append(jnp.asarray(M, jnp.bfloat16))
        if cfg_l["bn"]:
            bgb = np.concatenate([
                _lane_tile(np.asarray(p["b"]), Wo, cfg_l["cout"], 0.0),
                _lane_tile(np.asarray(p["gamma"]), Wo, cfg_l["cout"], 1.0),
                _lane_tile(np.asarray(p["beta"]), Wo, cfg_l["cout"], 0.0)], axis=0)
            args.append(jnp.asarray(bgb, jnp.float32))
        else:
            args.append(jnp.asarray(
                _lane_tile(np.asarray(p["b"]), Wo, cfg_l["cout"], 0.0), jnp.float32))

    # node_d_1: channels zero-padded to c_big so every lane axis is s16*c_big = 128.
    # (Padded channels get zero weight/bias/beta and gamma=1 -> numerically exact.)
    for li in (4, 5, 6):
        cfg_l, p = _LAYER_CFG[li], params[li]
        R, M, Ho, Wo = _conv_mats(np.asarray(p["w"]), s16, s16, 1,
                                  _same_pad_left(s16, cfg_l["k"], 1),
                                  n_batch, c_big, c_big)
        bgb = np.concatenate([
            _lane_tile(np.asarray(p["b"]), s16, c_big, 0.0),
            _lane_tile(np.asarray(p["gamma"]), s16, c_big, 1.0),
            _lane_tile(np.asarray(p["beta"]), s16, c_big, 0.0)], axis=0)
        if li == 5:
            args.append(jnp.asarray(R, jnp.float32))     # 3x3 row taps, shared by conv6/7
        args.append(jnp.asarray(M, jnp.bfloat16))
        args.append(jnp.asarray(bgb, jnp.float32))
    return tuple(args)


# ----------------------------------------------------------------------------
# Full forward: one pallas_call + two tiny layout HLOs
# ----------------------------------------------------------------------------
def d_image_encoder_forward(img_nchw, kernel_args):
    n, cin, s, _ = img_nchw.shape
    s16 = s // 16
    c_big = DF_DIM * 8
    assert kernel_args[0].shape[2] == n * s, "prepare_params batch/imsize mismatch"

    # Light VMEM budget check (v5e scoped default is 16 MiB; x2 for double-buffering).
    total_bytes = n * s * s * CIN0_PAD * 4 + (n * s16) * (s16 * c_big) * 4
    for a in kernel_args:
        total_bytes += a.size * a.dtype.itemsize
    assert 2 * total_bytes < 16 * 1024 * 1024, "exceeds v5e scoped-VMEM budget"

    # TODO(synk): the NCHW->(N*H, W*C) input relayout (and the inverse on the 2 KiB
    # output) stays as XLA glue; folding it into the kernel needs an in-kernel minor-dim
    # transpose that is not worth the lowering risk at this size.
    x = jnp.transpose(img_nchw.astype(jnp.float32), (0, 2, 3, 1))       # (N,H,W,3)
    x = jnp.pad(x, ((0, 0), (0, 0), (0, 0), (0, CIN0_PAD - cin)))        # lanes -> 128
    x = x.reshape(n * s, s * CIN0_PAD)

    bn0 = tuple((s >> (li + 1), _LAYER_CFG[li]["cout"],
                 1.0 / float(n * (s >> (li + 1)) ** 2)) for li in (1, 2, 3))
    bn1 = (s16, c_big, 1.0 / float(n * s16 * s16))

    # TODO(synk): single grid-less call runs on one TensorCore; a v7x dual-TC Cout split
    # only pays off at much larger batch/imsize.
    kern = functools.partial(_d_image_encoder_kernel, bn0=bn0, bn1=bn1)
    out = pl.pallas_call(
        kern,
        out_shape=jax.ShapeDtypeStruct((n * s16, s16 * c_big), jnp.float32),
    )(x, *kernel_args)

    out = out.reshape(n, s16, s16, c_big)           # rows=(n,h), lanes=(w,c)
    return jnp.transpose(out, (0, 3, 1, 2))         # -> NCHW to match PyTorch


# ----------------------------------------------------------------------------
if __name__ == "__main__":
    key = jax.random.PRNGKey(0)
    k_img, k_par = jax.random.split(key)

    batch = 2
    img = jax.random.normal(k_img, (batch, 3, IMSIZE, IMSIZE), jnp.float32)
    params = init_params(k_par)
    kernel_args = prepare_params(params, IMSIZE, batch)     # one-time repack (host)

    fwd = jax.jit(d_image_encoder_forward)
    out = jax.block_until_ready(fwd(img, kernel_args))

    expected = (batch, DF_DIM * 8, IMSIZE // 16, IMSIZE // 16)
    assert out.shape == expected, (out.shape, expected)
    assert bool(jnp.all(jnp.isfinite(out)))
    print("KERNEL_OK")
</pallas_src>

<mosaic_0001>
module attributes {stable_mosaic.version = 11 : i64} {
  func.func @_d_image_encoder_kernel(%arg0: memref<64x128xf32, #tpu.memory_space<vmem>>, %arg1: memref<4x32x64xf32, #tpu.memory_space<vmem>>, %arg2: memref<512x128xbf16, #tpu.memory_space<vmem>>, %arg3: memref<1x128xf32, #tpu.memory_space<vmem>>, %arg4: memref<4x16x32xf32, #tpu.memory_space<vmem>>, %arg5: memref<512x128xbf16, #tpu.memory_space<vmem>>, %arg6: memref<3x128xf32, #tpu.memory_space<vmem>>, %arg7: memref<4x8x16xf32, #tpu.memory_space<vmem>>, %arg8: memref<512x128xbf16, #tpu.memory_space<vmem>>, %arg9: memref<3x128xf32, #tpu.memory_space<vmem>>, %arg10: memref<4x4x8xf32, #tpu.memory_space<vmem>>, %arg11: memref<512x128xbf16, #tpu.memory_space<vmem>>, %arg12: memref<3x128xf32, #tpu.memory_space<vmem>>, %arg13: memref<128x128xbf16, #tpu.memory_space<vmem>>, %arg14: memref<3x128xf32, #tpu.memory_space<vmem>>, %arg15: memref<3x4x4xf32, #tpu.memory_space<vmem>>, %arg16: memref<384x128xbf16, #tpu.memory_space<vmem>>, %arg17: memref<3x128xf32, #tpu.memory_space<vmem>>, %arg18: memref<384x128xbf16, #tpu.memory_space<vmem>>, %arg19: memref<3x128xf32, #tpu.memory_space<vmem>>, %arg20: memref<4x128xf32, #tpu.memory_space<vmem>>) attributes {dimension_semantics = [], scalar_prefetch = 0 : i64, scratch_operands = 0 : i64, tpu.core_type = #tpu.core_type<tc>} {
    %c0 = arith.constant 0 : index
    %c0_0 = arith.constant 0 : index
    %0 = vector.load %arg0[%c0, %c0_0] : memref<64x128xf32, #tpu.memory_space<vmem>>, vector<64x128xf32>
    %c0_1 = arith.constant 0 : index
    %c0_2 = arith.constant 0 : index
    %1 = vector.load %arg3[%c0_1, %c0_2] : memref<1x128xf32, #tpu.memory_space<vmem>>, vector<1x128xf32>
    %c0_3 = arith.constant 0 : index
    %c0_4 = arith.constant 0 : index
    %c0_5 = arith.constant 0 : index
    %2 = vector.load %arg1[%c0_3, %c0_4, %c0_5] : memref<4x32x64xf32, #tpu.memory_space<vmem>>, vector<1x32x64xf32>
    %3 = vector.shape_cast %2 : vector<1x32x64xf32> to vector<32x64xf32>
    %cst = arith.constant dense<0.000000e+00> : vector<32x128xf32>
    %4 = tpu.matmul %3, %0, %cst {dimension_numbers = #tpu.dot_dimension_numbers<[1], [0], [0], [1], [0, 0, 1, 1], [], []>} : vector<32x64xf32>, vector<64x128xf32>, vector<32x128xf32> -> vector<32x128xf32>
    %c1 = arith.constant 1 : index
    %c0_6 = arith.constant 0 : index
    %c0_7 = arith.constant 0 : index
    %5 = vector.load %arg1[%c1, %c0_6, %c0_7] : memref<4x32x64xf32, #tpu.memory_space<vmem>>, vector<1x32x64xf32>
    %6 = vector.shape_cast %5 : vector<1x32x64xf32> to vector<32x64xf32>
    %cst_8 = arith.constant dense<0.000000e+00> : vector<32x128xf32>
    %7 = tpu.matmul %6, %0, %cst_8 {dimension_numbers = #tpu.dot_dimension_numbers<[1], [0], [0], [1], [0, 0, 1, 1], [], []>} : vector<32x64xf32>, vector<64x128xf32>, vector<32x128xf32> -> vector<32x128xf32>
    %c2 = arith.constant 2 : index
    %c0_9 = arith.constant 0 : index
    %c0_10 = arith.constant 0 : index
    %8 = vector.load %arg1[%c2, %c0_9, %c0_10] : memref<4x32x64xf32, #tpu.memory_space<vmem>>, vector<1x32x64xf32>
    %9 = vector.shape_cast %8 : vector<1x32x64xf32> to vector<32x64xf32>
    %cst_11 = arith.constant dense<0.000000e+00> : vector<32x128xf32>
    %10 = tpu.matmul %9, %0, %cst_11 {dimension_numbers = #tpu.dot_dimension_numbers<[1], [0], [0], [1], [0, 0, 1, 1], [], []>} : vector<32x64xf32>, vector<64x128xf32>, vector<32x128xf32> -> vector<32x128xf32>
    %c3 = arith.constant 3 : index
    %c0_12 = arith.constant 0 : index
    %c0_13 = arith.constant 0 : index
    %11 = vector.load %arg1[%c3, %c0_12, %c0_13] : memref<4x32x64xf32, #tpu.memory_space<vmem>>, vector<1x32x64xf32>
    %12 = vector.shape_cast %11 : vector<1x32x64xf32> to vector<32x64xf32>
    %cst_14 = arith.constant dense<0.000000e+00> : vector<32x128xf32>
    %13 = tpu.matmul %12, %0, %cst_14 {dimension_numbers = #tpu.dot_dimension_numbers<[1], [0], [0], [1], [0, 0, 1, 1], [], []>} : vector<32x64xf32>, vector<64x128xf32>, vector<32x128xf32> -> vector<32x128xf32>
    %14 = tpu.concatenate %4, %7, %10, %13 in 1 : vector<32x128xf32>, vector<32x128xf32>, vector<32x128xf32>, vector<32x128xf32> -> vector<32x512xf32>
    %15 = arith.truncf %14 : vector<32x512xf32> to vector<32x512xbf16>
    %c0_15 = arith.constant 0 : index
    %c0_16 = arith.constant 0 : index
    %16 = vector.load %arg2[%c0_15, %c0_16] : memref<512x128xbf16, #tpu.memory_space<vmem>>, vector<512x128xbf16>
    %cst_17 = arith.constant dense<0.000000e+00> : vector<32x128xf32>
    %17 = tpu.matmul %15, %16, %cst_17 {dimension_numbers = #tpu.dot_dimension_numbers<[1], [0], [0], [1], [0, 0, 1, 1], [], []>} : vector<32x512xbf16>, vector<512x128xbf16>, vector<32x128xf32> -> vector<32x128xf32>
    %18 = vector.broadcast %1 : vector<1x128xf32> to vector<32x128xf32>
    %19 = arith.addf %17, %18 : vector<32x128xf32>
    %cst_18 = arith.constant 0.000000e+00 : f32
    %20 = vector.broadcast %cst_18 : f32 to vector<32x128xf32>
    %21 = arith.cmpf ogt, %19, %20 : vector<32x128xf32>
    %cst_19 = arith.constant 2.000000e-01 : f32
    %22 = vector.broadcast %cst_19 : f32 to vector<32x128xf32>
    %23 = arith.mulf %22, %19 : vector<32x128xf32>
    %24 = arith.select %21, %19, %23 : vector<32x128xi1>, vector<32x128xf32>
    %c0_20 = arith.constant 0 : index
    %c0_21 = arith.constant 0 : index
    %25 = vector.load %arg6[%c0_20, %c0_21] : memref<3x128xf32, #tpu.memory_space<vmem>>, vector<1x128xf32>
    %c0_22 = arith.constant 0 : index
    %c0_23 = arith.constant 0 : index
    %c0_24 = arith.constant 0 : index
    %26 = vector.load %arg4[%c0_22, %c0_23, %c0_24] : memref<4x16x32xf32, #tpu.memory_space<vmem>>, vector<1x16x32xf32>
    %27 = vector.shape_cast %26 : vector<1x16x32xf32> to vector<16x32xf32>
    %cst_25 = arith.constant dense<0.000000e+00> : vector<16x128xf32>
    %28 = tpu.matmul %27, %24, %cst_25 {dimension_numbers = #tpu.dot_dimension_numbers<[1], [0], [0], [1], [0, 0, 1, 1], [], []>} : vector<16x32xf32>, vector<32x128xf32>, vector<16x128xf32> -> vector<16x128xf32>
    %c1_26 = arith.constant 1 : index
    %c0_27 = arith.constant 0 : index
    %c0_28 = arith.constant 0 : index
    %29 = vector.load %arg4[%c1_26, %c0_27, %c0_28] : memref<4x16x32xf32, #tpu.memory_space<vmem>>, vector<1x16x32xf32>
    %30 = vector.shape_cast %29 : vector<1x16x32xf32> to vector<16x32xf32>
    %cst_29 = arith.constant dense<0.000000e+00> : vector<16x128xf32>
    %31 = tpu.matmul %30, %24, %cst_29 {dimension_numbers = #tpu.dot_dimension_numbers<[1], [0], [0], [1], [0, 0, 1, 1], [], []>} : vector<16x32xf32>, vector<32x128xf32>, vector<16x128xf32> -> vector<16x128xf32>
    %c2_30 = arith.constant 2 : index
    %c0_31 = arith.constant 0 : index
    %c0_32 = arith.constant 0 : index
    %32 = vector.load %arg4[%c2_30, %c0_31, %c0_32] : memref<4x16x32xf32, #tpu.memory_space<vmem>>, vector<1x16x32xf32>
    %33 = vector.shape_cast %32 : vector<1x16x32xf32> to vector<16x32xf32>
    %cst_33 = arith.constant dense<0.000000e+00> : vector<16x128xf32>
    %34 = tpu.matmul %33, %24, %cst_33 {dimension_numbers = #tpu.dot_dimension_numbers<[1], [0], [0], [1], [0, 0, 1, 1], [], []>} : vector<16x32xf32>, vector<32x128xf32>, vector<16x128xf32> -> vector<16x128xf32>
    %c3_34 = arith.constant 3 : index
    %c0_35 = arith.constant 0 : index
    %c0_36 = arith.constant 0 : index
    %35 = vector.load %arg4[%c3_34, %c0_35, %c0_36] : memref<4x16x32xf32, #tpu.memory_space<vmem>>, vector<1x16x32xf32>
    %36 = vector.shape_cast %35 : vector<1x16x32xf32> to vector<16x32xf32>
    %cst_37 = arith.constant dense<0.000000e+00> : vector<16x128xf32>
    %37 = tpu.matmul %36, %24, %cst_37 {dimension_numbers = #tpu.dot_dimension_numbers<[1], [0], [0], [1], [0, 0, 1, 1], [], []>} : vector<16x32xf32>, vector<32x128xf32>, vector<16x128xf32> -> vector<16x128xf32>
    %38 = tpu.concatenate %28, %31, %34, %37 in 1 : vector<16x128xf32>, vector<16x128xf32>, vector<16x128xf32>, vector<16x128xf32> -> vector<16x512xf32>
    %39 = arith.truncf %38 : vector<16x512xf32> to vector<16x512xbf16>
    %c0_38 = arith.constant 0 : index
    %c0_39 = arith.constant 0 : index
    %40 = vector.load %arg5[%c0_38, %c0_39] : memref<512x128xbf16, #tpu.memory_space<vmem>>, vector<512x128xbf16>
    %cst_40 = arith.constant dense<0.000000e+00> : vector<16x128xf32>
    %41 = tpu.matmul %39, %40, %cst_40 {dimension_numbers = #tpu.dot_dimension_numbers<[1], [0], [0], [1], [0, 0, 1, 1], [], []>} : vector<16x512xbf16>, vector<512x128xbf16>, vector<16x128xf32> -> vector<16x128xf32>
    %42 = vector.broadcast %25 : vector<1x128xf32> to vector<16x128xf32>
    %43 = arith.addf %41, %42 : vector<16x128xf32>
    %cst_41 = arith.constant dense<0.000000e+00> : vector<128xf32>
    %44 = vector.multi_reduction <add>, %43, %cst_41 [0] : vector<16x128xf32> to vector<128xf32>
    %45 = vector.shape_cast %44 : vector<128xf32> to vector<1x128xf32>
    %c64_i32 = arith.constant 64 : i32
    %46 = tpu.dynamic_rotate %45 by %c64_i32 dim 1 : vector<1x128xf32>, i32 -> vector<1x128xf32>
    %47 = arith.addf %45, %46 : vector<1x128xf32>
    %c32_i32 = arith.constant 32 : i32
    %48 = tpu.dynamic_rotate %47 by %c32_i32 dim 1 : vector<1x128xf32>, i32 -> vector<1x128xf32>
    %49 = arith.addf %47, %48 : vector<1x128xf32>
    %c16_i32 = arith.constant 16 : i32
    %50 = tpu.dynamic_rotate %49 by %c16_i32 dim 1 : vector<1x128xf32>, i32 -> vector<1x128xf32>
    %51 = arith.addf %49, %50 : vector<1x128xf32>
    %cst_42 = arith.constant 7.812500e-03 : f32
    %52 = vector.broadcast %cst_42 : f32 to vector<1x128xf32>
    %53 = arith.mulf %51, %52 : vector<1x128xf32>
    %54 = vector.broadcast %53 : vector<1x128xf32> to vector<16x128xf32>
    %55 = arith.subf %43, %54 : vector<16x128xf32>
    %56 = arith.mulf %55, %55 : vector<16x128xf32>
    %cst_43 = arith.constant dense<0.000000e+00> : vector<128xf32>
    %57 = vector.multi_reduction <add>, %56, %cst_43 [0] : vector<16x128xf32> to vector<128xf32>
    %58 = vector.shape_cast %57 : vector<128xf32> to vector<1x128xf32>
    %c64_i32_44 = arith.constant 64 : i32
    %59 = tpu.dynamic_rotate %58 by %c64_i32_44 dim 1 : vector<1x128xf32>, i32 -> vector<1x128xf32>
    %60 = arith.addf %58, %59 : vector<1x128xf32>
    %c32_i32_45 = arith.constant 32 : i32
    %61 = tpu.dynamic_rotate %60 by %c32_i32_45 dim 1 : vector<1x128xf32>, i32 -> vector<1x128xf32>
    %62 = arith.addf %60, %61 : vector<1x128xf32>
    %c16_i32_46 = arith.constant 16 : i32
    %63 = tpu.dynamic_rotate %62 by %c16_i32_46 dim 1 : vector<1x128xf32>, i32 -> vector<1x128xf32>
    %64 = arith.addf %62, %63 : vector<1x128xf32>
    %cst_47 = arith.constant 7.812500e-03 : f32
    %65 = vector.broadcast %cst_47 : f32 to vector<1x128xf32>
    %66 = arith.mulf %64, %65 : vector<1x128xf32>
    %c1_48 = arith.constant 1 : index
    %c0_49 = arith.constant 0 : index
    %67 = vector.load %arg6[%c1_48, %c0_49] : memref<3x128xf32, #tpu.memory_space<vmem>>, vector<1x128xf32>
    %cst_50 = arith.constant 9.99999974E-6 : f32
    %68 = vector.broadcast %cst_50 : f32 to vector<1x128xf32>
    %69 = arith.addf %66, %68 : vector<1x128xf32>
    %70 = math.rsqrt %69 : vector<1x128xf32>
    %71 = arith.mulf %67, %70 : vector<1x128xf32>
    %72 = vector.broadcast %71 : vector<1x128xf32> to vector<16x128xf32>
    %73 = arith.mulf %55, %72 : vector<16x128xf32>
    %c2_51 = arith.constant 2 : index
    %c0_52 = arith.constant 0 : index
    %74 = vector.load %arg6[%c2_51, %c0_52] : memref<3x128xf32, #tpu.memory_space<vmem>>, vector<1x128xf32>
    %75 = vector.broadcast %74 : vector<1x128xf32> to vector<16x128xf32>
    %76 = arith.addf %73, %75 : vector<16x128xf32>
    %cst_53 = arith.constant 0.000000e+00 : f32
    %77 = vector.broadcast %cst_53 : f32 to vector<16x128xf32>
    %78 = arith.cmpf ogt, %76, %77 : vector<16x128xf32>
    %cst_54 = arith.constant 2.000000e-01 : f32
    %79 = vector.broadcast %cst_54 : f32 to vector<16x128xf32>
    %80 = arith.mulf %79, %76 : vector<16x128xf32>
    %81 = arith.select %78, %76, %80 : vector<16x128xi1>, vector<16x128xf32>
    %c0_55 = arith.constant 0 : index
    %c0_56 = arith.constant 0 : index
    %82 = vector.load %arg9[%c0_55, %c0_56] : memref<3x128xf32, #tpu.memory_space<vmem>>, vector<1x128xf32>
    %c0_57 = arith.constant 0 : index
    %c0_58 = arith.constant 0 : index
    %c0_59 = arith.constant 0 : index
    %83 = vector.load %arg7[%c0_57, %c0_58, %c0_59] : memref<4x8x16xf32, #tpu.memory_space<vmem>>, vector<1x8x16xf32>
    %84 = vector.shape_cast %83 : vector<1x8x16xf32> to vector<8x16xf32>
    %cst_60 = arith.constant dense<0.000000e+00> : vector<8x128xf32>
    %85 = tpu.matmul %84, %81, %cst_60 {dimension_numbers = #tpu.dot_dimension_numbers<[1], [0], [0], [1], [0, 0, 1, 1], [], []>} : vector<8x16xf32>, vector<16x128xf32>, vector<8x128xf32> -> vector<8x128xf32>
    %c1_61 = arith.constant 1 : index
    %c0_62 = arith.constant 0 : index
    %c0_63 = arith.constant 0 : index
    %86 = vector.load %arg7[%c1_61, %c0_62, %c0_63] : memref<4x8x16xf32, #tpu.memory_space<vmem>>, vector<1x8x16xf32>
    %87 = vector.shape_cast %86 : vector<1x8x16xf32> to vector<8x16xf32>
    %cst_64 = arith.constant dense<0.000000e+00> : vector<8x128xf32>
    %88 = tpu.matmul %87, %81, %cst_64 {dimension_numbers = #tpu.dot_dimension_numbers<[1], [0], [0], [1], [0, 0, 1, 1], [], []>} : vector<8x16xf32>, vector<16x128xf32>, vector<8x128xf32> -> vector<8x128xf32>
    %c2_65 = arith.constant 2 : index
    %c0_66 = arith.constant 0 : index
    %c0_67 = arith.constant 0 : index
    %89 = vector.load %arg7[%c2_65, %c0_66, %c0_67] : memref<4x8x16xf32, #tpu.memory_space<vmem>>, vector<1x8x16xf32>
    %90 = vector.shape_cast %89 : vector<1x8x16xf32> to vector<8x16xf32>
    %cst_68 = arith.constant dense<0.000000e+00> : vector<8x128xf32>
    %91 = tpu.matmul %90, %81, %cst_68 {dimension_numbers = #tpu.dot_dimension_numbers<[1], [0], [0], [1], [0, 0, 1, 1], [], []>} : vector<8x16xf32>, vector<16x128xf32>, vector<8x128xf32> -> vector<8x128xf32>
    %c3_69 = arith.constant 3 : index
    %c0_70 = arith.constant 0 : index
    %c0_71 = arith.constant 0 : index
    %92 = vector.load %arg7[%c3_69, %c0_70, %c0_71] : memref<4x8x16xf32, #tpu.memory_space<vmem>>, vector<1x8x16xf32>
    %93 = vector.shape_cast %92 : vector<1x8x16xf32> to vector<8x16xf32>
    %cst_72 = arith.constant dense<0.000000e+00> : vector<8x128xf32>
    %94 = tpu.matmul %93, %81, %cst_72 {dimension_numbers = #tpu.dot_dimension_numbers<[1], [0], [0], [1], [0, 0, 1, 1], [], []>} : vector<8x16xf32>, vector<16x128xf32>, vector<8x128xf32> -> vector<8x128xf32>
    %95 = tpu.concatenate %85, %88, %91, %94 in 1 : vector<8x128xf32>, vector<8x128xf32>, vector<8x128xf32>, vector<8x128xf32> -> vector<8x512xf32>
    %96 = arith.truncf %95 : vector<8x512xf32> to vector<8x512xbf16>
    %c0_73 = arith.constant 0 : index
    %c0_74 = arith.constant 0 : index
    %97 = vector.load %arg8[%c0_73, %c0_74] : memref<512x128xbf16, #tpu.memory_space<vmem>>, vector<512x128xbf16>
    %cst_75 = arith.constant dense<0.000000e+00> : vector<8x128xf32>
    %98 = tpu.matmul %96, %97, %cst_75 {dimension_numbers = #tpu.dot_dimension_numbers<[1], [0], [0], [1], [0, 0, 1, 1], [], []>} : vector<8x512xbf16>, vector<512x128xbf16>, vector<8x128xf32> -> vector<8x128xf32>
    %99 = vector.broadcast %82 : vector<1x128xf32> to vector<8x128xf32>
    %100 = arith.addf %98, %99 : vector<8x128xf32>
    %cst_76 = arith.constant dense<0.000000e+00> : vector<128xf32>
    %101 = vector.multi_reduction <add>, %100, %cst_76 [0] : vector<8x128xf32> to vector<128xf32>
    %102 = vector.shape_cast %101 : vector<128xf32> to vector<1x128xf32>
    %c64_i32_77 = arith.constant 64 : i32
    %103 = tpu.dynamic_rotate %102 by %c64_i32_77 dim 1 : vector<1x128xf32>, i32 -> vector<1x128xf32>
    %104 = arith.addf %102, %103 : vector<1x128xf32>
    %c32_i32_78 = arith.constant 32 : i32
    %105 = tpu.dynamic_rotate %104 by %c32_i32_78 dim 1 : vector<1x128xf32>, i32 -> vector<1x128xf32>
    %106 = arith.addf %104, %105 : vector<1x128xf32>
    %cst_79 = arith.constant 3.125000e-02 : f32
    %107 = vector.broadcast %cst_79 : f32 to vector<1x128xf32>
    %108 = arith.mulf %106, %107 : vector<1x128xf32>
    %109 = vector.broadcast %108 : vector<1x128xf32> to vector<8x128xf32>
    %110 = arith.subf %100, %109 : vector<8x128xf32>
    %111 = arith.mulf %110, %110 : vector<8x128xf32>
    %cst_80 = arith.constant dense<0.000000e+00> : vector<128xf32>
    %112 = vector.multi_reduction <add>, %111, %cst_80 [0] : vector<8x128xf32> to vector<128xf32>
    %113 = vector.shape_cast %112 : vector<128xf32> to vector<1x128xf32>
    %c64_i32_81 = arith.constant 64 : i32
    %114 = tpu.dynamic_rotate %113 by %c64_i32_81 dim 1 : vector<1x128xf32>, i32 -> vector<1x128xf32>
    %115 = arith.addf %113, %114 : vector<1x128xf32>
    %c32_i32_82 = arith.constant 32 : i32
    %116 = tpu.dynamic_rotate %115 by %c32_i32_82 dim 1 : vector<1x128xf32>, i32 -> vector<1x128xf32>
    %117 = arith.addf %115, %116 : vector<1x128xf32>
    %cst_83 = arith.constant 3.125000e-02 : f32
    %118 = vector.broadcast %cst_83 : f32 to vector<1x128xf32>
    %119 = arith.mulf %117, %118 : vector<1x128xf32>
    %c1_84 = arith.constant 1 : index
    %c0_85 = arith.constant 0 : index
    %120 = vector.load %arg9[%c1_84, %c0_85] : memref<3x128xf32, #tpu.memory_space<vmem>>, vector<1x128xf32>
    %cst_86 = arith.constant 9.99999974E-6 : f32
    %121 = vector.broadcast %cst_86 : f32 to vector<1x128xf32>
    %122 = arith.addf %119, %121 : vector<1x128xf32>
    %123 = math.rsqrt %122 : vector<1x128xf32>
    %124 = arith.mulf %120, %123 : vector<1x128xf32>
    %125 = vector.broadcast %124 : vector<1x128xf32> to vector<8x128xf32>
    %126 = arith.mulf %110, %125 : vector<8x128xf32>
    %c2_87 = arith.constant 2 : index
    %c0_88 = arith.constant 0 : index
    %127 = vector.load %arg9[%c2_87, %c0_88] : memref<3x128xf32, #tpu.memory_space<vmem>>, vector<1x128xf32>
    %128 = vector.broadcast %127 : vector<1x128xf32> to vector<8x128xf32>
    %129 = arith.addf %126, %128 : vector<8x128xf32>
    %c0_89 = arith.constant 0 : index
    %c0_90 = arith.constant 0 : index
    %130 = vector.load %arg12[%c0_89, %c0_90] : memref<3x128xf32, #tpu.memory_space<vmem>>, vector<1x128xf32>
    %c0_91 = arith.constant 0 : index
    %c0_92 = arith.constant 0 : index
    %c0_93 = arith.constant 0 : index
    %131 = vector.load %arg10[%c0_91, %c0_92, %c0_93] : memref<4x4x8xf32, #tpu.memory_space<vmem>>, vector<1x4x8xf32>
    %132 = vector.shape_cast %131 : vector<1x4x8xf32> to vector<4x8xf32>
    %cst_94 = arith.constant dense<0.000000e+00> : vector<4x128xf32>
    %133 = tpu.matmul %132, %129, %cst_94 {dimension_numbers = #tpu.dot_dimension_numbers<[1], [0], [0], [1], [0, 0, 1, 1], [], []>} : vector<4x8xf32>, vector<8x128xf32>, vector<4x128xf32> -> vector<4x128xf32>
    %c1_95 = arith.constant 1 : index
    %c0_96 = arith.constant 0 : index
    %c0_97 = arith.constant 0 : index
    %134 = vector.load %arg10[%c1_95, %c0_96, %c0_97] : memref<4x4x8xf32, #tpu.memory_space<vmem>>, vector<1x4x8xf32>
    %135 = vector.shape_cast %134 : vector<1x4x8xf32> to vector<4x8xf32>
    %cst_98 = arith.constant dense<0.000000e+00> : vector<4x128xf32>
    %136 = tpu.matmul %135, %129, %cst_98 {dimension_numbers = #tpu.dot_dimension_numbers<[1], [0], [0], [1], [0, 0, 1, 1], [], []>} : vector<4x8xf32>, vector<8x128xf32>, vector<4x128xf32> -> vector<4x128xf32>
    %c2_99 = arith.constant 2 : index
    %c0_100 = arith.constant 0 : index
    %c0_101 = arith.constant 0 : index
    %137 = vector.load %arg10[%c2_99, %c0_100, %c0_101] : memref<4x4x8xf32, #tpu.memory_space<vmem>>, vector<1x4x8xf32>
    %138 = vector.shape_cast %137 : vector<1x4x8xf32> to vector<4x8xf32>
    %cst_102 = arith.constant dense<0.000000e+00> : vector<4x128xf32>
    %139 = tpu.matmul %138, %129, %cst_102 {dimension_numbers = #tpu.dot_dimension_numbers<[1], [0], [0], [1], [0, 0, 1, 1], [], []>} : vector<4x8xf32>, vector<8x128xf32>, vector<4x128xf32> -> vector<4x128xf32>
    %c3_103 = arith.constant 3 : index
    %c0_104 = arith.constant 0 : index
    %c0_105 = arith.constant 0 : index
    %140 = vector.load %arg10[%c3_103, %c0_104, %c0_105] : memref<4x4x8xf32, #tpu.memory_space<vmem>>, vector<1x4x8xf32>
    %141 = vector.shape_cast %140 : vector<1x4x8xf32> to vector<4x8xf32>
    %cst_106 = arith.constant dense<0.000000e+00> : vector<4x128xf32>
    %142 = tpu.matmul %141, %129, %cst_106 {dimension_numbers = #tpu.dot_dimension_numbers<[1], [0], [0], [1], [0, 0, 1, 1], [], []>} : vector<4x8xf32>, vector<8x128xf32>, vector<4x128xf32> -> vector<4x128xf32>
    %143 = tpu.concatenate %133, %136, %139, %142 in 1 : vector<4x128xf32>, vector<4x128xf32>, vector<4x128xf32>, vector<4x128xf32> -> vector<4x512xf32>
    %144 = arith.truncf %143 : vector<4x512xf32> to vector<4x512xbf16>
    %c0_107 = arith.constant 0 : index
    %c0_108 = arith.constant 0 : index
    %145 = vector.load %arg11[%c0_107, %c0_108] : memref<512x128xbf16, #tpu.memory_space<vmem>>, vector<512x128xbf16>
    %cst_109 = arith.constant dense<0.000000e+00> : vector<4x128xf32>
    %146 = tpu.matmul %144, %145, %cst_109 {dimension_numbers = #tpu.dot_dimension_numbers<[1], [0], [0], [1], [0, 0, 1, 1], [], []>} : vector<4x512xbf16>, vector<512x128xbf16>, vector<4x128xf32> -> vector<4x128xf32>
    %147 = vector.broadcast %130 : vector<1x128xf32> to vector<4x128xf32>
    %148 = arith.addf %146, %147 : vector<4x128xf32>
    %cst_110 = arith.constant dense<0.000000e+00> : vector<128xf32>
    %149 = vector.multi_reduction <add>, %148, %cst_110 [0] : vector<4x128xf32> to vector<128xf32>
    %150 = vector.shape_cast %149 : vector<128xf32> to vector<1x128xf32>
    %c64_i32_111 = arith.constant 64 : i32
    %151 = tpu.dynamic_rotate %150 by %c64_i32_111 dim 1 : vector<1x128xf32>, i32 -> vector<1x128xf32>
    %152 = arith.addf %150, %151 : vector<1x128xf32>
    %cst_112 = arith.constant 1.250000e-01 : f32
    %153 = vector.broadcast %cst_112 : f32 to vector<1x128xf32>
    %154 = arith.mulf %152, %153 : vector<1x128xf32>
    %155 = vector.broadcast %154 : vector<1x128xf32> to vector<4x128xf32>
    %156 = arith.subf %148, %155 : vector<4x128xf32>
    %157 = arith.mulf %156, %156 : vector<4x128xf32>
    %cst_113 = arith.constant dense<0.000000e+00> : vector<128xf32>
    %158 = vector.multi_reduction <add>, %157, %cst_113 [0] : vector<4x128xf32> to vector<128xf32>
    %159 = vector.shape_cast %158 : vector<128xf32> to vector<1x128xf32>
    %c64_i32_114 = arith.constant 64 : i32
    %160 = tpu.dynamic_rotate %159 by %c64_i32_114 dim 1 : vector<1x128xf32>, i32 -> vector<1x128xf32>
    %161 = arith.addf %159, %160 : vector<1x128xf32>
    %cst_115 = arith.constant 1.250000e-01 : f32
    %162 = vector.broadcast %cst_115 : f32 to vector<1x128xf32>
    %163 = arith.mulf %161, %162 : vector<1x128xf32>
    %c1_116 = arith.constant 1 : index
    %c0_117 = arith.constant 0 : index
    %164 = vector.load %arg12[%c1_116, %c0_117] : memref<3x128xf32, #tpu.memory_space<vmem>>, vector<1x128xf32>
    %cst_118 = arith.constant 9.99999974E-6 : f32
    %165 = vector.broadcast %cst_118 : f32 to vector<1x128xf32>
    %166 = arith.addf %163, %165 : vector<1x128xf32>
    %167 = math.rsqrt %166 : vector<1x128xf32>
    %168 = arith.mulf %164, %167 : vector<1x128xf32>
    %169 = vector.broadcast %168 : vector<1x128xf32> to vector<4x128xf32>
    %170 = arith.mulf %156, %169 : vector<4x128xf32>
    %c2_119 = arith.constant 2 : index
    %c0_120 = arith.constant 0 : index
    %171 = vector.load %arg12[%c2_119, %c0_120] : memref<3x128xf32, #tpu.memory_space<vmem>>, vector<1x128xf32>
    %172 = vector.broadcast %171 : vector<1x128xf32> to vector<4x128xf32>
    %173 = arith.addf %170, %172 : vector<4x128xf32>
    %c0_121 = arith.constant 0 : index
    %c0_122 = arith.constant 0 : index
    %174 = vector.load %arg14[%c0_121, %c0_122] : memref<3x128xf32, #tpu.memory_space<vmem>>, vector<1x128xf32>
    %175 = arith.truncf %173 : vector<4x128xf32> to vector<4x128xbf16>
    %c0_123 = arith.constant 0 : index
    %c0_124 = arith.constant 0 : index
    %176 = vector.load %arg13[%c0_123, %c0_124] : memref<128x128xbf16, #tpu.memory_space<vmem>>, vector<128x128xbf16>
    %cst_125 = arith.constant dense<0.000000e+00> : vector<4x128xf32>
    %177 = tpu.matmul %175, %176, %cst_125 {dimension_numbers = #tpu.dot_dimension_numbers<[1], [0], [0], [1], [0, 0, 1, 1], [], []>} : vector<4x128xbf16>, vector<128x128xbf16>, vector<4x128xf32> -> vector<4x128xf32>
    %178 = vector.broadcast %174 : vector<1x128xf32> to vector<4x128xf32>
    %179 = arith.addf %177, %178 : vector<4x128xf32>
    %cst_126 = arith.constant dense<0.000000e+00> : vector<128xf32>
    %180 = vector.multi_reduction <add>, %179, %cst_126 [0] : vector<4x128xf32> to vector<128xf32>
    %181 = vector.shape_cast %180 : vector<128xf32> to vector<1x128xf32>
    %c64_i32_127 = arith.constant 64 : i32
    %182 = tpu.dynamic_rotate %181 by %c64_i32_127 dim 1 : vector<1x128xf32>, i32 -> vector<1x128xf32>
    %183 = arith.addf %181, %182 : vector<1x128xf32>
    %cst_128 = arith.constant 1.250000e-01 : f32
    %184 = vector.broadcast %cst_128 : f32 to vector<1x128xf32>
    %185 = arith.mulf %183, %184 : vector<1x128xf32>
    %186 = vector.broadcast %185 : vector<1x128xf32> to vector<4x128xf32>
    %187 = arith.subf %179, %186 : vector<4x128xf32>
    %188 = arith.mulf %187, %187 : vector<4x128xf32>
    %cst_129 = arith.constant dense<0.000000e+00> : vector<128xf32>
    %189 = vector.multi_reduction <add>, %188, %cst_129 [0] : vector<4x128xf32> to vector<128xf32>
    %190 = vector.shape_cast %189 : vector<128xf32> to vector<1x128xf32>
    %c64_i32_130 = arith.constant 64 : i32
    %191 = tpu.dynamic_rotate %190 by %c64_i32_130 dim 1 : vector<1x128xf32>, i32 -> vector<1x128xf32>
    %192 = arith.addf %190, %191 : vector<1x128xf32>
    %cst_131 = arith.constant 1.250000e-01 : f32
    %193 = vector.broadcast %cst_131 : f32 to vector<1x128xf32>
    %194 = arith.mulf %192, %193 : vector<1x128xf32>
    %c1_132 = arith.constant 1 : index
    %c0_133 = arith.constant 0 : index
    %195 = vector.load %arg14[%c1_132, %c0_133] : memref<3x128xf32, #tpu.memory_space<vmem>>, vector<1x128xf32>
    %cst_134 = arith.constant 9.99999974E-6 : f32
    %196 = vector.broadcast %cst_134 : f32 to vector<1x128xf32>
    %197 = arith.addf %194, %196 : vector<1x128xf32>
    %198 = math.rsqrt %197 : vector<1x128xf32>
    %199 = arith.mulf %195, %198 : vector<1x128xf32>
    %200 = vector.broadcast %199 : vector<1x128xf32> to vector<4x128xf32>
    %201 = arith.mulf %187, %200 : vector<4x128xf32>
    %c2_135 = arith.constant 2 : index
    %c0_136 = arith.constant 0 : index
    %202 = vector.load %arg14[%c2_135, %c0_136] : memref<3x128xf32, #tpu.memory_space<vmem>>, vector<1x128xf32>
    %203 = vector.broadcast %202 : vector<1x128xf32> to vector<4x128xf32>
    %204 = arith.addf %201, %203 : vector<4x128xf32>
    %cst_137 = arith.constant 0.000000e+00 : f32
    %205 = vector.broadcast %cst_137 : f32 to vector<4x128xf32>
    %206 = arith.cmpf ogt, %204, %205 : vector<4x128xf32>
    %cst_138 = arith.constant 2.000000e-01 : f32
    %207 = vector.broadcast %cst_138 : f32 to vector<4x128xf32>
    %208 = arith.mulf %207, %204 : vector<4x128xf32>
    %209 = arith.select %206, %204, %208 : vector<4x128xi1>, vector<4x128xf32>
    %c0_139 = arith.constant 0 : index
    %c0_140 = arith.constant 0 : index
    %210 = vector.load %arg17[%c0_139, %c0_140] : memref<3x128xf32, #tpu.memory_space<vmem>>, vector<1x128xf32>
    %c0_141 = arith.constant 0 : index
    %c0_142 = arith.constant 0 : index
    %c0_143 = arith.constant 0 : index
    %211 = vector.load %arg15[%c0_141, %c0_142, %c0_143] : memref<3x4x4xf32, #tpu.memory_space<vmem>>, vector<1x4x4xf32>
    %212 = vector.shape_cast %211 : vector<1x4x4xf32> to vector<4x4xf32>
    %cst_144 = arith.constant dense<0.000000e+00> : vector<4x128xf32>
    %213 = tpu.matmul %212, %209, %cst_144 {dimension_numbers = #tpu.dot_dimension_numbers<[1], [0], [0], [1], [0, 0, 1, 1], [], []>} : vector<4x4xf32>, vector<4x128xf32>, vector<4x128xf32> -> vector<4x128xf32>
    %c1_145 = arith.constant 1 : index
    %c0_146 = arith.constant 0 : index
    %c0_147 = arith.constant 0 : index
    %214 = vector.load %arg15[%c1_145, %c0_146, %c0_147] : memref<3x4x4xf32, #tpu.memory_space<vmem>>, vector<1x4x4xf32>
    %215 = vector.shape_cast %214 : vector<1x4x4xf32> to vector<4x4xf32>
    %cst_148 = arith.constant dense<0.000000e+00> : vector<4x128xf32>
    %216 = tpu.matmul %215, %209, %cst_148 {dimension_numbers = #tpu.dot_dimension_numbers<[1], [0], [0], [1], [0, 0, 1, 1], [], []>} : vector<4x4xf32>, vector<4x128xf32>, vector<4x128xf32> -> vector<4x128xf32>
    %c2_149 = arith.constant 2 : index
    %c0_150 = arith.constant 0 : index
    %c0_151 = arith.constant 0 : index
    %217 = vector.load %arg15[%c2_149, %c0_150, %c0_151] : memref<3x4x4xf32, #tpu.memory_space<vmem>>, vector<1x4x4xf32>
    %218 = vector.shape_cast %217 : vector<1x4x4xf32> to vector<4x4xf32>
    %cst_152 = arith.constant dense<0.000000e+00> : vector<4x128xf32>
    %219 = tpu.matmul %218, %209, %cst_152 {dimension_numbers = #tpu.dot_dimension_numbers<[1], [0], [0], [1], [0, 0, 1, 1], [], []>} : vector<4x4xf32>, vector<4x128xf32>, vector<4x128xf32> -> vector<4x128xf32>
    %220 = tpu.concatenate %213, %216, %219 in 1 : vector<4x128xf32>, vector<4x128xf32>, vector<4x128xf32> -> vector<4x384xf32>
    %221 = arith.truncf %220 : vector<4x384xf32> to vector<4x384xbf16>
    %c0_153 = arith.constant 0 : index
    %c0_154 = arith.constant 0 : index
    %222 = vector.load %arg16[%c0_153, %c0_154] : memref<384x128xbf16, #tpu.memory_space<vmem>>, vector<384x128xbf16>
    %cst_155 = arith.constant dense<0.000000e+00> : vector<4x128xf32>
    %223 = tpu.matmul %221, %222, %cst_155 {dimension_numbers = #tpu.dot_dimension_numbers<[1], [0], [0], [1], [0, 0, 1, 1], [], []>} : vector<4x384xbf16>, vector<384x128xbf16>, vector<4x128xf32> -> vector<4x128xf32>
    %224 = vector.broadcast %210 : vector<1x128xf32> to vector<4x128xf32>
    %225 = arith.addf %223, %224 : vector<4x128xf32>
    %cst_156 = arith.constant dense<0.000000e+00> : vector<128xf32>
    %226 = vector.multi_reduction <add>, %225, %cst_156 [0] : vector<4x128xf32> to vector<128xf32>
    %227 = vector.shape_cast %226 : vector<128xf32> to vector<1x128xf32>
    %c64_i32_157 = arith.constant 64 : i32
    %228 = tpu.dynamic_rotate %227 by %c64_i32_157 dim 1 : vector<1x128xf32>, i32 -> vector<1x128xf32>
    %229 = arith.addf %227, %228 : vector<1x128xf32>
    %cst_158 = arith.constant 1.250000e-01 : f32
    %230 = vector.broadcast %cst_158 : f32 to vector<1x128xf32>
    %231 = arith.mulf %229, %230 : vector<1x128xf32>
    %232 = vector.broadcast %231 : vector<1x128xf32> to vector<4x128xf32>
    %233 = arith.subf %225, %232 : vector<4x128xf32>
    %234 = arith.mulf %233, %233 : vector<4x128xf32>
    %cst_159 = arith.constant dense<0.000000e+00> : vector<128xf32>
    %235 = vector.multi_reduction <add>, %234, %cst_159 [0] : vector<4x128xf32> to vector<128xf32>
    %236 = vector.shape_cast %235 : vector<128xf32> to vector<1x128xf32>
    %c64_i32_160 = arith.constant 64 : i32
    %237 = tpu.dynamic_rotate %236 by %c64_i32_160 dim 1 : vector<1x128xf32>, i32 -> vector<1x128xf32>
    %238 = arith.addf %236, %237 : vector<1x128xf32>
    %cst_161 = arith.constant 1.250000e-01 : f32
    %239 = vector.broadcast %cst_161 : f32 to vector<1x128xf32>
    %240 = arith.mulf %238, %239 : vector<1x128xf32>
    %c1_162 = arith.constant 1 : index
    %c0_163 = arith.constant 0 : index
    %241 = vector.load %arg17[%c1_162, %c0_163] : memref<3x128xf32, #tpu.memory_space<vmem>>, vector<1x128xf32>
    %cst_164 = arith.constant 9.99999974E-6 : f32
    %242 = vector.broadcast %cst_164 : f32 to vector<1x128xf32>
    %243 = arith.addf %240, %242 : vector<1x128xf32>
    %244 = math.rsqrt %243 : vector<1x128xf32>
    %245 = arith.mulf %241, %244 : vector<1x128xf32>
    %246 = vector.broadcast %245 : vector<1x128xf32> to vector<4x128xf32>
    %247 = arith.mulf %233, %246 : vector<4x128xf32>
    %c2_165 = arith.constant 2 : index
    %c0_166 = arith.constant 0 : index
    %248 = vector.load %arg17[%c2_165, %c0_166] : memref<3x128xf32, #tpu.memory_space<vmem>>, vector<1x128xf32>
    %249 = vector.broadcast %248 : vector<1x128xf32> to vector<4x128xf32>
    %250 = arith.addf %247, %249 : vector<4x128xf32>
    %cst_167 = arith.constant 0.000000e+00 : f32
    %251 = vector.broadcast %cst_167 : f32 to vector<4x128xf32>
    %252 = arith.cmpf ogt, %250, %251 : vector<4x128xf32>
    %cst_168 = arith.constant 2.000000e-01 : f32
    %253 = vector.broadcast %cst_168 : f32 to vector<4x128xf32>
    %254 = arith.mulf %253, %250 : vector<4x128xf32>
    %255 = arith.select %252, %250, %254 : vector<4x128xi1>, vector<4x128xf32>
    %c0_169 = arith.constant 0 : index
    %c0_170 = arith.constant 0 : index
    %256 = vector.load %arg19[%c0_169, %c0_170] : memref<3x128xf32, #tpu.memory_space<vmem>>, vector<1x128xf32>
    %c0_171 = arith.constant 0 : index
    %c0_172 = arith.constant 0 : index
    %c0_173 = arith.constant 0 : index
    %257 = vector.load %arg15[%c0_171, %c0_172, %c0_173] : memref<3x4x4xf32, #tpu.memory_space<vmem>>, vector<1x4x4xf32>
    %258 = vector.shape_cast %257 : vector<1x4x4xf32> to vector<4x4xf32>
    %cst_174 = arith.constant dense<0.000000e+00> : vector<4x128xf32>
    %259 = tpu.matmul %258, %255, %cst_174 {dimension_numbers = #tpu.dot_dimension_numbers<[1], [0], [0], [1], [0, 0, 1, 1], [], []>} : vector<4x4xf32>, vector<4x128xf32>, vector<4x128xf32> -> vector<4x128xf32>
    %c1_175 = arith.constant 1 : index
    %c0_176 = arith.constant 0 : index
    %c0_177 = arith.constant 0 : index
    %260 = vector.load %arg15[%c1_175, %c0_176, %c0_177] : memref<3x4x4xf32, #tpu.memory_space<vmem>>, vector<1x4x4xf32>
    %261 = vector.shape_cast %260 : vector<1x4x4xf32> to vector<4x4xf32>
    %cst_178 = arith.constant dense<0.000000e+00> : vector<4x128xf32>
    %262 = tpu.matmul %261, %255, %cst_178 {dimension_numbers = #tpu.dot_dimension_numbers<[1], [0], [0], [1], [0, 0, 1, 1], [], []>} : vector<4x4xf32>, vector<4x128xf32>, vector<4x128xf32> -> vector<4x128xf32>
    %c2_179 = arith.constant 2 : index
    %c0_180 = arith.constant 0 : index
    %c0_181 = arith.constant 0 : index
    %263 = vector.load %arg15[%c2_179, %c0_180, %c0_181] : memref<3x4x4xf32, #tpu.memory_space<vmem>>, vector<1x4x4xf32>
    %264 = vector.shape_cast %263 : vector<1x4x4xf32> to vector<4x4xf32>
    %cst_182 = arith.constant dense<0.000000e+00> : vector<4x128xf32>
    %265 = tpu.matmul %264, %255, %cst_182 {dimension_numbers = #tpu.dot_dimension_numbers<[1], [0], [0], [1], [0, 0, 1, 1], [], []>} : vector<4x4xf32>, vector<4x128xf32>, vector<4x128xf32> -> vector<4x128xf32>
    %266 = tpu.concatenate %259, %262, %265 in 1 : vector<4x128xf32>, vector<4x128xf32>, vector<4x128xf32> -> vector<4x384xf32>
    %267 = arith.truncf %266 : vector<4x384xf32> to vector<4x384xbf16>
    %c0_183 = arith.constant 0 : index
    %c0_184 = arith.constant 0 : index
    %268 = vector.load %arg18[%c0_183, %c0_184] : memref<384x128xbf16, #tpu.memory_space<vmem>>, vector<384x128xbf16>
    %cst_185 = arith.constant dense<0.000000e+00> : vector<4x128xf32>
    %269 = tpu.matmul %267, %268, %cst_185 {dimension_numbers = #tpu.dot_dimension_numbers<[1], [0], [0], [1], [0, 0, 1, 1], [], []>} : vector<4x384xbf16>, vector<384x128xbf16>, vector<4x128xf32> -> vector<4x128xf32>
    %270 = vector.broadcast %256 : vector<1x128xf32> to vector<4x128xf32>
    %271 = arith.addf %269, %270 : vector<4x128xf32>
    %cst_186 = arith.constant dense<0.000000e+00> : vector<128xf32>
    %272 = vector.multi_reduction <add>, %271, %cst_186 [0] : vector<4x128xf32> to vector<128xf32>
    %273 = vector.shape_cast %272 : vector<128xf32> to vector<1x128xf32>
    %c64_i32_187 = arith.constant 64 : i32
    %274 = tpu.dynamic_rotate %273 by %c64_i32_187 dim 1 : vector<1x128xf32>, i32 -> vector<1x128xf32>
    %275 = arith.addf %273, %274 : vector<1x128xf32>
    %cst_188 = arith.constant 1.250000e-01 : f32
    %276 = vector.broadcast %cst_188 : f32 to vector<1x128xf32>
    %277 = arith.mulf %275, %276 : vector<1x128xf32>
    %278 = vector.broadcast %277 : vector<1x128xf32> to vector<4x128xf32>
    %279 = arith.subf %271, %278 : vector<4x128xf32>
    %280 = arith.mulf %279, %279 : vector<4x128xf32>
    %cst_189 = arith.constant dense<0.000000e+00> : vector<128xf32>
    %281 = vector.multi_reduction <add>, %280, %cst_189 [0] : vector<4x128xf32> to vector<128xf32>
    %282 = vector.shape_cast %281 : vector<128xf32> to vector<1x128xf32>
    %c64_i32_190 = arith.constant 64 : i32
    %283 = tpu.dynamic_rotate %282 by %c64_i32_190 dim 1 : vector<1x128xf32>, i32 -> vector<1x128xf32>
    %284 = arith.addf %282, %283 : vector<1x128xf32>
    %cst_191 = arith.constant 1.250000e-01 : f32
    %285 = vector.broadcast %cst_191 : f32 to vector<1x128xf32>
    %286 = arith.mulf %284, %285 : vector<1x128xf32>
    %c1_192 = arith.constant 1 : index
    %c0_193 = arith.constant 0 : index
    %287 = vector.load %arg19[%c1_192, %c0_193] : memref<3x128xf32, #tpu.memory_space<vmem>>, vector<1x128xf32>
    %cst_194 = arith.constant 9.99999974E-6 : f32
    %288 = vector.broadcast %cst_194 : f32 to vector<1x128xf32>
    %289 = arith.addf %286, %288 : vector<1x128xf32>
    %290 = math.rsqrt %289 : vector<1x128xf32>
    %291 = arith.mulf %287, %290 : vector<1x128xf32>
    %292 = vector.broadcast %291 : vector<1x128xf32> to vector<4x128xf32>
    %293 = arith.mulf %279, %292 : vector<4x128xf32>
    %c2_195 = arith.constant 2 : index
    %c0_196 = arith.constant 0 : index
    %294 = vector.load %arg19[%c2_195, %c0_196] : memref<3x128xf32, #tpu.memory_space<vmem>>, vector<1x128xf32>
    %295 = vector.broadcast %294 : vector<1x128xf32> to vector<4x128xf32>
    %296 = arith.addf %293, %295 : vector<4x128xf32>
    %297 = arith.addf %173, %296 : vector<4x128xf32>
    %cst_197 = arith.constant 0.000000e+00 : f32
    %298 = vector.broadcast %cst_197 : f32 to vector<4x128xf32>
    %299 = arith.cmpf ogt, %297, %298 : vector<4x128xf32>
    %cst_198 = arith.constant 2.000000e-01 : f32
    %300 = vector.broadcast %cst_198 : f32 to vector<4x128xf32>
    %301 = arith.mulf %300, %297 : vector<4x128xf32>
    %302 = arith.select %299, %297, %301 : vector<4x128xi1>, vector<4x128xf32>
    %c0_199 = arith.constant 0 : index
    %c0_200 = arith.constant 0 : index
    %303 = vector.load %arg20[%c0_199, %c0_200] : memref<4x128xf32, #tpu.memory_space<vmem>>, vector<4x128xf32>
    tpu.vector_store %arg20[%c0_199, %c0_200], %302 {strides = array<i32>} : memref<4x128xf32, #tpu.memory_space<vmem>>, vector<4x128xf32>,
    return
  }
}

</mosaic_0001>

<bundles_post_ra>
// kernel: d_image_encoder_forward.1
= control target key start
LH: loop header
LB: loop body
LE: loop exit
PB: predicated region body
PF: predicated region fallthrough
CT: control target
= control target key end

     0   :  { %s6710_s0 = inlined_call_operand.vmem [shape: f32[64,128], index: 0, kind: input, shape index: {}]   ;;  %s6711_s1 = inlined_call_operand.hbm [shape: f32[4,32,64], index: 1, kind: input, shape index: {}]   ;;  %s6712_s2 = inlined_call_operand.vmem [shape: bf16[512,128], index: 2, kind: input, shape index: {}]   ;;  %s6713_s3 = inlined_call_operand.hbm [shape: f32[1,128], index: 3, kind: input, shape index: {}]   ;;  %s6714_s4 = inlined_call_operand.hbm [shape: f32[4,16,32], index: 4, kind: input, shape index: {}]   ;;  %s6715_s5 = inlined_call_operand.vmem [shape: bf16[512,128], index: 5, kind: input, shape index: {}]   ;;  %s6716_s6 = inlined_call_operand.hbm [shape: f32[3,128], index: 6, kind: input, shape index: {}]   ;;  %s6717_s7 = inlined_call_operand.hbm [shape: f32[4,8,16], index: 7, kind: input, shape index: {}]   ;;  %s6718_s8 = inlined_call_operand.vmem [shape: bf16[512,128], index: 8, kind: input, shape index: {}]   ;;  %s6719_s9 = inlined_call_operand.hbm [shape: f32[3,128], index: 9, kind: input, shape index: {}]   ;;  %s6720_s10 = inlined_call_operand.vmem [shape: f32[4,4,8], index: 10, kind: input, shape index: {}]   ;;  %s6721_s11 = inlined_call_operand.vmem [shape: bf16[512,128], index: 11, kind: input, shape index: {}]   ;;  %s6722_s12 = inlined_call_operand.vmem [shape: f32[3,128], index: 12, kind: input, shape index: {}]   ;;  %s6723_s13 = inlined_call_operand.hbm [shape: bf16[128,128], index: 13, kind: input, shape index: {}]   ;;  %s6724_s14 = inlined_call_operand.vmem [shape: f32[3,128], index: 14, kind: input, shape index: {}]   ;;  %s6725_s15 = inlined_call_operand.vmem [shape: f32[3,4,4], index: 15, kind: input, shape index: {}]   ;;  %s6726_s16 = inlined_call_operand.vmem [shape: bf16[384,128], index: 16, kind: input, shape index: {}]   ;;  %s6727_s17 = inlined_call_operand.vmem [shape: f32[3,128], index: 17, kind: input, shape index: {}]   ;;  %s6728_s18 = inlined_call_operand.vmem [shape: bf16[384,128], index: 18, kind: input, shape index: {}]   ;;  %s6729_s19 = inlined_call_operand.vmem [shape: f32[3,128], index: 19, kind: input, shape index: {}]   ;;  %s6730_s20 = inlined_call_operand.vmem [shape: f32[4,128], index: 20, kind: output, shape index: {}]  }
   0x1   :  { %6736 = sst [smem:[#allocation17_spill]] %s6710_s0 }
   0x2   :  { %6737 = sst [smem:[#allocation18_spill]] %s6711_s1 }
   0x3   :  { %6738 = sst [smem:[#allocation19_spill]] %s6712_s2 }
   0x4   :  { %6739 = sst [smem:[#allocation20_spill]] %s6713_s3 }
   0x5   :  { %6740 = sst [smem:[#allocation21_spill]] %s6714_s4 }
   0x6   :  { %6741 = sst [smem:[#allocation22_spill]] %s6730_s20 }
   0x7   :  { %25 = vsyncpa [#allocation3], 0 }
   0x8   :  { %26 = vsyncpa [#allocation5], 0 }
   0x9   :  { %27 = vsyncpa [#allocation8], 0 }
   0xa   :  { %28 = vsyncpa [#allocation11], 0  ;;  %s5701_s1 = smov [#allocation4]   ;;  %s5702_s23 = smov [#allocation7]  }
   0xb   :  { %s51_s22 = sshll.u32 %s5701_s1, 4  ;;  %s75_s24 = sshll.u32 %s5702_s23, 4  ;;  %s52_s22 = int_to_ptr.vmem [resolvable:$true] %s51_s22  ;;  %s76_s24 = int_to_ptr.vmem [resolvable:$true] %s75_s24 }
   0xc   :  { %s6742_s3 = sld [smem:[#allocation20_spill]] }
  0x12   :  { %s5539_s26 = scalar_lea.hbm %s6742_s3, 16 }
  0x13   :  { %p5540_p0 = scmp.ne.s32.totalorder %s6742_s3, %s5539_s26  ;;  %p5543_p1 = scmp.lt.u32.totalorder %s5539_s26, %s6742_s3 }
  0x15   :  { %p5545_p2 = pnand %p5543_p1, %p5540_p0 }
  0x17   :  { %5548 = shalt.err (!%p5545_p2)
}
  0x18   :  { %s5549_s30 = scalar_lea.vmem %s52_s22, 16  ;;  %s5553_s0 = scalar_lea.vmem %s52_s22, 32 }
  0x19   :  { %p5550_p3 = scmp.ne.s32.totalorder %s52_s22, %s5549_s30  ;;  %p5554_p4 = scmp.lt.s32.totalorder %s52_s22, %s52_s22 }
  0x1a   :  { %p5555_p5 = scmp.lt.s32.totalorder %s5553_s0, %s5549_s30 }
  0x1c   :  { %p5556_p6 = por %p5555_p5, %p5554_p4 }
  0x1e   :  { %p5557_p7 = pnand %p5556_p6, %p5550_p3 }
  0x20   :  { %5560 = shalt.err (!%p5557_p7)
}
  0x21   :  { %54 = dma.hbm_to_vmem [thread:$0]  %s6742_s3, 16, %s52_s22, [#allocation5]  }
  0x22   :  { %s5561_s25 = scalar_lea.hbm %s6716_s6, 64 }
  0x23   :  { %p5562_p8 = scmp.ne.s32.totalorder %s6716_s6, %s5561_s25  ;;  %p5565_p9 = scmp.lt.u32.totalorder %s5561_s25, %s6716_s6 }
  0x25   :  { %p5567_p10 = pnand %p5565_p9, %p5562_p8 }
  0x27   :  { %5570 = shalt.err (!%p5567_p10)
}
  0x28   :  { %s5571_s29 = scalar_lea.vmem %s76_s24, 64  ;;  %p5576_p12 = scmp.lt.s32.totalorder %s76_s24, %s76_s24 }
  0x29   :  { %p5572_p11 = scmp.ne.s32.totalorder %s76_s24, %s5571_s29  ;;  %p5577_p13 = scmp.lt.s32.totalorder %s5571_s29, %s5571_s29 }
  0x2b   :  { %p5578_p0 = por %p5577_p13, %p5576_p12 }
  0x2d   :  { %p5579_p1 = pnand %p5578_p0, %p5572_p11 }
  0x2f   :  { %5582 = shalt.err (!%p5579_p1)
}
  0x30   :  { %78 = dma.hbm_to_vmem [thread:$0]  %s6716_s6, 64, %s76_s24, [#allocation8]  }
  0x31   :  { %s5703_s30 = smov [#allocation10]   ;;  %s5704_s21 = smov [#allocation2]  }
  0x32   :  { %s99_s0 = sshll.u32 %s5703_s30, 4  ;;  %s36_s1 = sshll.u32 %s5704_s21, 4  ;;  %s100_s0 = int_to_ptr.vmem [resolvable:$true] %s99_s0  ;;  %s5846_s1 = int_to_ptr.vmem [resolvable:$true] %s36_s1 }
  0x33   :  { %s5583_s25 = scalar_lea.hbm %s6719_s9, 64 }
  0x34   :  { %p5584_p2 = scmp.ne.s32.totalorder %s6719_s9, %s5583_s25  ;;  %p5587_p3 = scmp.lt.u32.totalorder %s5583_s25, %s6719_s9 }
  0x36   :  { %p5589_p4 = pnand %p5587_p3, %p5584_p2 }
  0x38   :  { %5592 = shalt.err (!%p5589_p4)
}
  0x39   :  { %s5593_s6 = scalar_lea.vmem %s100_s0, 64  ;;  %p5598_p6 = scmp.lt.s32.totalorder %s100_s0, %s100_s0 }
  0x3a   :  { %p5594_p5 = scmp.ne.s32.totalorder %s100_s0, %s5593_s6  ;;  %p5599_p7 = scmp.lt.s32.totalorder %s5593_s6, %s5593_s6 }
  0x3c   :  { %p5600_p8 = por %p5599_p7, %p5598_p6 }
  0x3e   :  { %p5601_p9 = pnand %p5600_p8, %p5594_p5 }
  0x40   :  { %5604 = shalt.err (!%p5601_p9)
}
  0x41   :  { %102 = dma.hbm_to_vmem [thread:$0]  %s6719_s9, 64, %s100_s0, [#allocation11]  }
  0x42   :  { %s6743_s30 = sld [smem:[#allocation18_spill]] }
  0x48   :  { %s5605_s21 = scalar_lea.hbm %s6743_s30, 2048 }
  0x49   :  { %p5606_p10 = scmp.ne.s32.totalorder %s6743_s30, %s5605_s21  ;;  %p5609_p11 = scmp.lt.u32.totalorder %s5605_s21, %s6743_s30 }
  0x4b   :  { %p5611_p12 = pnand %p5609_p11, %p5606_p10 }
  0x4d   :  { %5614 = shalt.err (!%p5611_p12)
}
  0x4e   :  { %s5615_s26 = scalar_lea.vmem %s5846_s1, 2048  ;;  %p5620_p0 = scmp.lt.s32.totalorder %s5846_s1, %s5846_s1 }
  0x4f   :  { %p5616_p13 = scmp.ne.s32.totalorder %s5846_s1, %s5615_s26  ;;  %p5621_p1 = scmp.lt.s32.totalorder %s5615_s26, %s5615_s26 }
  0x51   :  { %p5622_p2 = por %p5621_p1, %p5620_p0 }
  0x53   :  { %p5623_p3 = pnand %p5622_p2, %p5616_p13 }
  0x55   :  { %5626 = shalt.err (!%p5623_p3)
}
  0x56   :  { %s5705_s9 = smov 128   ;;  %s5706_s0 = smov 8  }
  0x57   :  { %42 = dma.hbm_to_vmem [thread:$0]  %s6743_s30, 2048, %s5846_s1, [#allocation3], %s5705_s9, %s5705_s9, %s5706_s0  }
  0x58   :  { %s5707_s6 = smov [#allocation6]   ;;  %s5708_s29 = smov [#allocation9]  }
  0x59   :  { %s60_s24 = sshll.u32 %s5707_s6, 4  ;;  %s84_s22 = sshll.u32 %s5708_s29, 4  ;;  %s61_s24 = int_to_ptr.vmem [resolvable:$true] %s60_s24  ;;  %s5880_s22 = int_to_ptr.vmem [resolvable:$true] %s84_s22 }
  0x5a   :  { %s6744_s23 = sld [smem:[#allocation21_spill]] }
  0x60   :  { %s5627_s2 = scalar_lea.hbm %s6744_s23, 1024 }
  0x61   :  { %p5628_p4 = scmp.ne.s32.totalorder %s6744_s23, %s5627_s2  ;;  %p5631_p5 = scmp.lt.u32.totalorder %s5627_s2, %s6744_s23 }
  0x63   :  { %p5633_p6 = pnand %p5631_p5, %p5628_p4 }
  0x65   :  { %5636 = shalt.err (!%p5633_p6)
}
  0x66   :  { %s5637_s1 = scalar_lea.vmem %s61_s24, 1024  ;;  %p5642_p8 = scmp.lt.s32.totalorder %s61_s24, %s61_s24 }
  0x67   :  { %p5638_p7 = scmp.ne.s32.totalorder %s61_s24, %s5637_s1  ;;  %p5643_p9 = scmp.lt.s32.totalorder %s5637_s1, %s5637_s1 }
  0x69   :  { %p5644_p10 = por %p5643_p9, %p5642_p8 }
  0x6b   :  { %p5645_p11 = pnand %p5644_p10, %p5638_p7 }
  0x6d   :  { %5648 = shalt.err (!%p5645_p11)
}
  0x6e   :  { %66 = dma.hbm_to_vmem [thread:$0]  %s6744_s23, 1024, %s61_s24, [#allocation5], %s5705_s9, %s5705_s9, %s5706_s0  }
  0x6f   :  { %s5649_s20 = scalar_lea.hbm %s6717_s7, 512 }
  0x70   :  { %p5650_p12 = scmp.ne.s32.totalorder %s6717_s7, %s5649_s20  ;;  %p5653_p13 = scmp.lt.u32.totalorder %s5649_s20, %s6717_s7 }
  0x72   :  { %p5655_p0 = pnand %p5653_p13, %p5650_p12 }
  0x74   :  { %5658 = shalt.err (!%p5655_p0)
}
  0x75   :  { %s5659_s25 = scalar_lea.vmem %s5880_s22, 512  ;;  %p5664_p2 = scmp.lt.s32.totalorder %s5880_s22, %s5880_s22 }
  0x76   :  { %p5660_p1 = scmp.ne.s32.totalorder %s5880_s22, %s5659_s25  ;;  %p5665_p3 = scmp.lt.s32.totalorder %s5659_s25, %s5659_s25 }
  0x78   :  { %p5666_p4 = por %p5665_p3, %p5664_p2 }
  0x7a   :  { %p5667_p5 = pnand %p5666_p4, %p5660_p1 }
  0x7c   :  { %5670 = shalt.err (!%p5667_p5)
}
  0x7d   :  { %90 = dma.hbm_to_vmem [thread:$0]  %s6717_s7, 512, %s5880_s22, [#allocation8], %s5705_s9, %s5705_s9, %s5706_s0  }
  0x7e   :  { %s5709_s27 = smov [#allocation12]   ;;  %s5671_s28 = scalar_lea.hbm %s6723_s13, 1024 }
  0x7f   :  { %s114_s26 = sshll.u32 %s5709_s27, 4  ;;  %p5672_p6 = scmp.ne.s32.totalorder %s6723_s13, %s5671_s28  ;;  %s115_s26 = int_to_ptr.vmem [resolvable:$true] %s114_s26 }
  0x80   :  { %p5675_p7 = scmp.lt.u32.totalorder %s5671_s28, %s6723_s13 }
  0x82   :  { %p5677_p8 = pnand %p5675_p7, %p5672_p6 }
  0x84   :  { %5680 = shalt.err (!%p5677_p8)
}
  0x85   :  { %s5681_s3 = scalar_lea.vmem %s115_s26, 1024  ;;  %p5686_p10 = scmp.lt.s32.totalorder %s115_s26, %s115_s26 }
  0x86   :  { %p5682_p9 = scmp.ne.s32.totalorder %s115_s26, %s5681_s3  ;;  %p5687_p11 = scmp.lt.s32.totalorder %s5681_s3, %s5681_s3 }
  0x88   :  { %p5688_p12 = por %p5687_p11, %p5686_p10 }
  0x8a   :  { %p5689_p13 = pnand %p5688_p12, %p5682_p9 }
  0x8c   :  { %5692 = shalt.err (!%p5689_p13)
}
  0x8d   :  { %s5710_s7 = smov 64   ;;  %s5711_s9 = smov 4  }
  0x8e   :  { %120 = dma.hbm_to_vmem [thread:$0]  %s6723_s13, 1024, %s115_s26, [#allocation11], %s5710_s7, %s5710_s7, %s5711_s9  }
  0x8f   :  { %5693 = dma.done.wait [#allocation3], 2048  }
  0x90   :  { %5694 = vsyncadd [#allocation3], 4294965248 }
  0x91   :  { %5695 = dma.done.wait [#allocation5], 1040  }
  0x92   :  { %5696 = vsyncadd [#allocation5], 4294966256 }
  0x93   :  { %5697 = dma.done.wait [#allocation8], 576  }
  0x94   :  { %5698 = vsyncadd [#allocation8], 4294966720 }
  0x95   :  { %5699 = dma.done.wait [#allocation11], 1088  }
  0x96   :  { %5700 = vsyncadd [#allocation11], 4294966208  ;;  %s6745_s25 = sld [smem:[#allocation17_spill]]  ;;  %vm168_vm0 = vcmask 523264   ;;  %v267_v8 = vld [vmem:[#allocation2 + $0x20] sm:$0xff]  ;;  %v268_v14 = vld [vmem:[#allocation2 + $0x28] sm:$0xff] }
  0x97   :  { %v164_v9 = vld [vmem:[#allocation2] sm:$0xff]  ;;  %4987 = vmatprep.mubr.msk.f32.mxu1 %vm168_vm0, %v267_v8  ;;  %v165_v15 = vld [vmem:[#allocation2 + $0x8] sm:$0xff]  ;;  %v269_v16 = vld [vmem:[#allocation2 + $0x30] sm:$0xff]  ;;  %s6746_s21 = sld [smem:[#allocation19_spill]]  ;;  %vm955_vm1 = vcmask 261120   ;;  %s5713_s3 = smov 16  }
  0x98   :  { %4965 = vmatprep.mubr.msk.f32.mxu0 %vm168_vm0, %v164_v9  ;;  %v166_v17 = vld [vmem:[#allocation2 + $0x10] sm:$0xff]  ;;  %v270_v18 = vld [vmem:[#allocation2 + $0x38] sm:$0xff]  ;;  %v369_v20 = vld [vmem:[#allocation2 + $0x40] sm:$0xff]  ;;  %vm5715_vm6 = vmmov 0   ;;  %vm1702_vm9 = vcmask 130048   ;;  %vm2394_vm10 = vcmask 64512  }
  0x99   :  { %v167_v19 = vld [vmem:[#allocation2 + $0x18] sm:$0xff]  ;;  %v471_v21 = vld [vmem:[#allocation2 + $0x60] sm:$0xff]  ;;  %v370_v24 = vld [vmem:[#allocation2 + $0x48] sm:$0xff]  ;;  %vm3037_vm11 = vcmask 1043456   ;;  %vm3239_vm13 = vcmask 31744  }
  0x9a   :  { %v472_v25 = vld [vmem:[#allocation2 + $0x68] sm:$0xff]  ;;  %v473_v26 = vld [vmem:[#allocation2 + $0x70] sm:$0xff]  ;;  %v474_v32 = vld [vmem:[#allocation2 + $0x78] sm:$0xff] }
  0x9b   :  { %v371_v27 = vld [vmem:[#allocation2 + $0x50] sm:$0xff]  ;;  %v372_v33 = vld [vmem:[#allocation2 + $0x58] sm:$0xff] }
  0x9c   :  { %v155_v0 = vld [vmem:[%s6745_s25] sm:$0xff]  ;;  %v156_v1 = vld [vmem:[%s6745_s25 + $0x8] sm:$0xff]  ;;  %v157_v2 = vld [vmem:[%s6745_s25 + $0x10] sm:$0xff] }
  0x9d   :  { %v5219_v3 = vpack.c.bf16 %v156_v1, %v155_v0  ;;  %v158_v4 = vld [vmem:[%s6745_s25 + $0x18] sm:$0xff]  ;;  %v159_v6 = vld [vmem:[%s6745_s25 + $0x20] sm:$0xff]  ;;  %v160_v7 = vld [vmem:[%s6745_s25 + $0x28] sm:$0xff] }
  0x9e   :  { %v5223_v5 = vpack.c.bf16 %v158_v4, %v157_v2  ;;  %v5227_v10 = vpack.c.bf16 %v160_v7, %v159_v6  ;;  %v161_v11 = vld [vmem:[%s6745_s25 + $0x30] sm:$0xff]  ;;  %v162_v12 = vld [vmem:[%s6745_s25 + $0x38] sm:$0xff]  ;;  %v5343_v22 = vld [vmem:[%s6746_s21 + $0x40] sm:$0xff]  }
  0x9f   :  { %5220 = vmatprep.subr.bf16.mxu0 %v5219_v3  ;;  %5236 = vmatprep.subr.bf16.mxu1 %v5219_v3  ;;  %v5231_v13 = vpack.c.bf16 %v162_v12, %v161_v11  ;;  %v5352_v23 = vld [vmem:[%s6746_s21 + $0xc0] sm:$0xff]   ;;  %v5345_v30 = vld [vmem:[%s6746_s21 + $0x48] sm:$0xff]   ;;  %v5347_v36 = vld [vmem:[%s6746_s21 + $0x50] sm:$0xff]  }
  0xa0   :  { %5222 = vmatpush3.bf16.msra.mxu0 %v5219_v3  ;;  %5238 = vmatpush3.bf16.msra.mxu1 %v5219_v3  ;;  %v5344_v28 = vld [vmem:[%s6746_s21] sm:$0xff]   ;;  %v5356_v31 = vld [vmem:[%s6746_s21 + $0xc8] sm:$0xff]   ;;  %v5360_v37 = vld [vmem:[%s6746_s21 + $0xd0] sm:$0xff]  }
  0xa1   :  { %5224 = vmatprep.subr.bf16.mxu0 %v5223_v5  ;;  %5240 = vmatprep.subr.bf16.mxu1 %v5223_v5  ;;  %v5354_v29 = vld [vmem:[%s6746_s21 + $0x80] sm:$0xff]   ;;  %v5346_v34 = vld [vmem:[%s6746_s21 + $0x8] sm:$0xff]   ;;  %v5348_v38 = vld [vmem:[%s6746_s21 + $0x10] sm:$0xff]  }
  0xa2   :  { %v5358_v35 = vld [vmem:[%s6746_s21 + $0x88] sm:$0xff]   ;;  %v5362_v39 = vld [vmem:[%s6746_s21 + $0x90] sm:$0xff]   ;;  %v5349_v40 = vld [vmem:[%s6746_s21 + $0x58] sm:$0xff]  }
  0xa3   :  { %v5350_v41 = vld [vmem:[%s6746_s21 + $0x18] sm:$0xff]   ;;  %v5351_v42 = vld [vmem:[%s6746_s21 + $0x60] sm:$0xff]   ;;  %v5355_v44 = vld [vmem:[%s6746_s21 + $0x68] sm:$0xff]  }
  0xa4   :  { %5226 = vmatpush3.bf16.msra.mxu0 %v5223_v5  ;;  %5242 = vmatpush3.bf16.msra.mxu1 %v5223_v5  ;;  %v5353_v43 = vld [vmem:[%s6746_s21 + $0x20] sm:$0xff]   ;;  %v5357_v45 = vld [vmem:[%s6746_s21 + $0x28] sm:$0xff]   ;;  %v5359_v46 = vld [vmem:[%s6746_s21 + $0x70] sm:$0xff]  }
  0xa5   :  { %5228 = vmatprep.subr.bf16.mxu0 %v5227_v10  ;;  %5244 = vmatprep.subr.bf16.mxu1 %v5227_v10  ;;  %v5361_v47 = vld [vmem:[%s6746_s21 + $0x30] sm:$0xff]   ;;  %v5363_v48 = vld [vmem:[%s6746_s21 + $0x78] sm:$0xff]   ;;  %v5367_v52 = vld [vmem:[%s6746_s21 + $0xe0] sm:$0xff]  }
  0xa6   :  { %v5364_v49 = vld [vmem:[%s6746_s21 + $0xd8] sm:$0xff]   ;;  %v5368_v53 = vld [vmem:[%s6746_s21 + $0xa0] sm:$0xff]   ;;  %v5369_v54 = vld [vmem:[%s6746_s21 + $0xe8] sm:$0xff]  }
  0xa7   :  { %v5365_v50 = vld [vmem:[%s6746_s21 + $0x38] sm:$0xff]   ;;  %v5370_v55 = vld [vmem:[%s6746_s21 + $0xa8] sm:$0xff]   ;;  %v5371_v56 = vld [vmem:[%s6746_s21 + $0xf0] sm:$0xff]  }
  0xa8   :  { %5230 = vmatpush3.bf16.msra.mxu0 %v5227_v10  ;;  %5246 = vmatpush3.bf16.msra.mxu1 %v5227_v10  ;;  %v5366_v51 = vld [vmem:[%s6746_s21 + $0x98] sm:$0xff]   ;;  %v5372_v57 = vld [vmem:[%s6746_s21 + $0xb0] sm:$0xff]  }
  0xa9   :  { %5232 = vmatprep.subr.bf16.mxu0 %v5231_v13  ;;  %5248 = vmatprep.subr.bf16.mxu1 %v5231_v13  ;;  %v5373_v58 = vld [vmem:[%s6746_s21 + $0xf8] sm:$0xff]  }
  0xaa   :  { %v5374_v59 = vld [vmem:[%s6746_s21 + $0xb8] sm:$0xff]  }
  0xac   :  { %5234 = vmatpush3.bf16.msra.mxu0 %v5231_v13  ;;  %5250 = vmatpush3.bf16.msra.mxu1 %v5231_v13 }
  0xad   :  { %5252 = vmatprep.subr.bf16.mxu0 %v5219_v3  ;;  %5268 = vmatprep.subr.bf16.mxu1 %v5219_v3 }
  0xaf   :  { %4988 = vmatmul.mubr.msk.f32.vlgmr.msra.gmra.mrb[0].mxu1 %vm168_vm0, %v268_v14  ;;  %4966 = vmatmul.mubr.msk.f32.vlgmr.msra.gmra.mrb[0].mxu0 %vm168_vm0, %v165_v15 }
  0xb0   :  { %5254 = vmatpush3.bf16.msra.mxu0 %v5219_v3  ;;  %5270 = vmatpush3.bf16.msra.mxu1 %v5219_v3 }
  0xb1   :  { %5256 = vmatprep.subr.bf16.mxu0 %v5223_v5  ;;  %5272 = vmatprep.subr.bf16.mxu1 %v5223_v5 }
  0xb2   :  { %4990 = vmatprep.mubr.msk.f32.mxu1 %vm168_vm0, %v269_v16  ;;  %4968 = vmatprep.mubr.msk.f32.mxu0 %vm168_vm0, %v166_v17 }
  0xb3   :  { %4991 = vmatmul.mubr.msk.f32.gmra.mrb[2].mxu1 %vm168_vm0, %v270_v18  ;;  %4969 = vmatmul.mubr.msk.f32.gmra.mrb[2].mxu0 %vm168_vm0, %v167_v19 }
  0xb4   :  { %5258 = vmatpush3.bf16.msra.mxu0 %v5223_v5  ;;  %5274 = vmatpush3.bf16.msra.mxu1 %v5223_v5 }
  0xb5   :  { %5260 = vmatprep.subr.bf16.mxu0 %v5227_v10  ;;  %5276 = vmatprep.subr.bf16.mxu1 %v5227_v10 }
  0xb6   :  { %5009 = vmatprep.mubr.msk.f32.mxu0 %vm168_vm0, %v369_v20  ;;  %5031 = vmatprep.mubr.msk.f32.mxu1 %vm168_vm0, %v471_v21  ;;  %v1038_v20 = vld [vmem:[#allocation6 + $0x10] sm:$0xff]  ;;  %v953_v21 = vld [vmem:[#allocation6] sm:$0xff] }
  0xb8   :  { %5262 = vmatpush3.bf16.msra.mxu0 %v5227_v10  ;;  %5278 = vmatpush3.bf16.msra.mxu1 %v5227_v10 }
  0xb9   :  { %5264 = vmatprep.subr.bf16.mxu0 %v5231_v13  ;;  %5280 = vmatprep.subr.bf16.mxu1 %v5231_v13 }
  0xbc   :  { %5266 = vmatpush3.bf16.msra.mxu0 %v5231_v13  ;;  %5282 = vmatpush3.bf16.msra.mxu1 %v5231_v13 }
  0xbd   :  { %4634 = vmatprep.subr.bf16.mxu0 %v5343_v22  ;;  %4662 = vmatprep.subr.bf16.mxu1 %v5352_v23 }
  0xbf   :  { %5010 = vmatmul.mubr.msk.f32.vlgmr.msra.gmra.mrb[4].mxu0 %vm168_vm0, %v370_v24  ;;  %5032 = vmatmul.mubr.msk.f32.vlgmr.msra.gmra.mrb[4].mxu1 %vm168_vm0, %v472_v25 }
  0xc0   :  { %5034 = vmatprep.mubr.msk.f32.mxu1 %vm168_vm0, %v473_v26  ;;  %5012 = vmatprep.mubr.msk.f32.mxu0 %vm168_vm0, %v371_v27 }
  0xc1   :  { %4635 = vmatpush3.bf16.msra.mxu0 %v5344_v28  ;;  %4663 = vmatpush3.bf16.msra.mxu1 %v5354_v29 }
  0xc2   :  { %4636 = vmatprep.subr.bf16.mxu0 %v5345_v30  ;;  %4664 = vmatprep.subr.bf16.mxu1 %v5356_v31 }
  0xc3   :  { %5035 = vmatmul.mubr.msk.f32.gmra.mrb[6].mxu1 %vm168_vm0, %v474_v32  ;;  %5013 = vmatmul.mubr.msk.f32.gmra.mrb[6].mxu0 %vm168_vm0, %v372_v33 }
  0xc5   :  { %4637 = vmatpush3.bf16.msra.mxu0 %v5346_v34  ;;  %4665 = vmatpush3.bf16.msra.mxu1 %v5358_v35  ;;  %v4356_v34 = vld [vmem:[#allocation4] ss:$0 sm:$0xff] }
  0xc6   :  { %4638 = vmatprep.subr.bf16.mxu0 %v5347_v36  ;;  %4666 = vmatprep.subr.bf16.mxu1 %v5360_v37 }
  0xc9   :  { %4639 = vmatpush3.bf16.msra.mxu0 %v5348_v38  ;;  %4667 = vmatpush3.bf16.msra.mxu1 %v5362_v39 }
  0xca   :  { %4640 = vmatprep.subr.bf16.mxu0 %v5349_v40  ;;  %4668 = vmatprep.subr.bf16.mxu1 %v5364_v49 }
  0xcd   :  { %4641 = vmatpush3.bf16.msra.mxu0 %v5350_v41  ;;  %4669 = vmatpush3.bf16.msra.mxu1 %v5366_v51 }
  0xce   :  { %4642 = vmatprep.subr.bf16.mxu0 %v5351_v42  ;;  %4670 = vmatprep.subr.bf16.mxu1 %v5367_v52 }
  0xd1   :  { %4643 = vmatpush3.bf16.msra.mxu0 %v5353_v43  ;;  %4671 = vmatpush3.bf16.msra.mxu1 %v5368_v53 }
  0xd2   :  { %4644 = vmatprep.subr.bf16.mxu0 %v5355_v44  ;;  %4672 = vmatprep.subr.bf16.mxu1 %v5369_v54 }
  0xd5   :  { %4645 = vmatpush3.bf16.msra.mxu0 %v5357_v45  ;;  %4673 = vmatpush3.bf16.msra.mxu1 %v5370_v55 }
  0xd6   :  { %4646 = vmatprep.subr.bf16.mxu0 %v5359_v46  ;;  %4674 = vmatprep.subr.bf16.mxu1 %v5371_v56 }
  0xd9   :  { %4647 = vmatpush3.bf16.msra.mxu0 %v5361_v47  ;;  %4675 = vmatpush3.bf16.msra.mxu1 %v5372_v57 }
  0xda   :  { %4648 = vmatprep.subr.bf16.mxu0 %v5363_v48  ;;  %4676 = vmatprep.subr.bf16.mxu1 %v5373_v58 }
  0xdd   :  { %4649 = vmatpush3.bf16.msra.mxu0 %v5365_v50  ;;  %4677 = vmatpush3.bf16.msra.mxu1 %v5374_v59 }
 0x182   :  { %v4989_v60 = vpop.f32.mrb[0].mxu1  ;;  %v4967_v61 = vpop.f32.mrb[0].mxu0 }
 0x183   :  { %v349_v62 = vpop.f32.mrb[1].mxu1  ;;  %v247_v63 = vpop.f32.mrb[1].mxu0 }
 0x184   :  { %v573_v0 = vpack.c.bf16 %v4989_v60, %v349_v62  ;;  %v572_v1 = vpack.c.bf16 %v4967_v61, %v247_v63 }
 0x186   :  { %874 = vmatprep.mubr.bf16.mxu0 %v573_v0  ;;  %v4992_v2 = vpop.f32.mrb[2].mxu1  ;;  %v4970_v3 = vpop.f32.mrb[2].mxu0 }
 0x187   :  { %875 = vmatmul.mubr.bf16.vlgmr.msra.gmra.mrb[8].mxu0 %v572_v1  ;;  %v359_v4 = vpop.f32.mrb[3].mxu1  ;;  %v257_v5 = vpop.f32.mrb[3].mxu0  ;;  %v1039_v1 = vld [vmem:[#allocation6 + $0x18] sm:$0xff] }
 0x188   :  { %v577_v6 = vpack.c.bf16 %v4992_v2, %v359_v4  ;;  %v576_v7 = vpack.c.bf16 %v4970_v3, %v257_v5  ;;  %v954_v2 = vld [vmem:[#allocation6 + $0x8] sm:$0xff]  ;;  %v1122_v3 = vld [vmem:[#allocation6 + $0x20] sm:$0xff]  ;;  %v1206_v4 = vld [vmem:[#allocation6 + $0x30] sm:$0xff] }
 0x189   :  { %v5375_v5 = vld [vmem:[%s6715_s5 + $0x40] sm:$0xff]  }
 0x18a   :  { %882 = vmatprep.mubr.bf16.mxu0 %v577_v6  ;;  %v5380_v6 = vld [vmem:[%s6715_s5 + $0xc0] sm:$0xff]  }
 0x18f   :  { %883 = vmatmul.mubr.bf16.gmra.mrb[12].mxu0 %v576_v7  ;;  %v1123_v7 = vld [vmem:[#allocation6 + $0x28] sm:$0xff] }
 0x190   :  { %5045 = vmatprep.mubr.msk.f32.mxu0 %vm955_vm1, %v953_v21  ;;  %v5385_v21 = vld [vmem:[%s6715_s5 + $0x18] sm:$0xff]  }
 0x192   :  { %v5011_v8 = vpop.f32.mrb[4].mxu0  ;;  %v5033_v9 = vpop.f32.mrb[4].mxu1 }
 0x193   :  { %v451_v10 = vpop.f32.mrb[5].mxu0  ;;  %v553_v11 = vpop.f32.mrb[5].mxu1 }
 0x194   :  { %v574_v12 = vpack.c.bf16 %v5011_v8, %v451_v10  ;;  %v575_v13 = vpack.c.bf16 %v5033_v9, %v553_v11  ;;  %v1207_v8 = vld [vmem:[#allocation6 + $0x38] sm:$0xff]  ;;  %v5377_v11 = vld [vmem:[%s6715_s5 + $0x48] sm:$0xff]  }
 0x195   :  { %v5376_v9 = vld [vmem:[%s6715_s5] sm:$0xff]  }
 0x196   :  { %923 = vmatprep.mubr.bf16.mxu1 %v575_v13  ;;  %v5036_v14 = vpop.f32.mrb[6].mxu1  ;;  %v5014_v15 = vpop.f32.mrb[6].mxu0  ;;  %v5382_v10 = vld [vmem:[%s6715_s5 + $0x80] sm:$0xff]   ;;  %v5378_v13 = vld [vmem:[%s6715_s5 + $0x8] sm:$0xff]  }
 0x197   :  { %924 = vmatmul.mubr.bf16.vlgmr.msra.gmra.mrb[8].mxu1 %v574_v12  ;;  %v563_v16 = vpop.f32.mrb[7].mxu1  ;;  %v461_v17 = vpop.f32.mrb[7].mxu0  ;;  %v5384_v12 = vld [vmem:[%s6715_s5 + $0xc8] sm:$0xff]  }
 0x198   :  { %v579_v18 = vpack.c.bf16 %v5036_v14, %v563_v16  ;;  %v578_v19 = vpack.c.bf16 %v5014_v15, %v461_v17  ;;  %v5386_v14 = vld [vmem:[%s6715_s5 + $0x88] sm:$0xff]   ;;  %v5379_v15 = vld [vmem:[%s6715_s5 + $0x50] sm:$0xff]  }
 0x199   :  { %v5388_v16 = vld [vmem:[%s6715_s5 + $0xd0] sm:$0xff]  }
 0x19a   :  { %931 = vmatprep.mubr.bf16.mxu1 %v579_v18  ;;  %v5381_v17 = vld [vmem:[%s6715_s5 + $0x10] sm:$0xff]  }
 0x19b   :  { %v5390_v18 = vld [vmem:[%s6715_s5 + $0x90] sm:$0xff]  }
 0x19f   :  { %932 = vmatmul.mubr.bf16.gmra.mrb[12].mxu1 %v578_v19  ;;  %v5383_v19 = vld [vmem:[%s6715_s5 + $0x58] sm:$0xff]  }
 0x1a0   :  { %5056 = vmatprep.mubr.msk.f32.mxu1 %vm955_vm1, %v1038_v20  ;;  %v5392_v20 = vld [vmem:[%s6715_s5 + $0xd8] sm:$0xff]  }
 0x25a   :  { %v4650_v22 = vpop.f32.mrb[8].mxu0 }
 0x25b   :  { %v4651_v23 = vpop.f32.mrb[9].mxu0 }
 0x25c   :  { %v4652_v24 = vadd.f32 %v4651_v23, %v4650_v22  ;;  %v4653_v25 = vpop.f32.mrb[10].mxu0  ;;  %v5394_v22 = vld [vmem:[%s6715_s5 + $0x98] sm:$0xff]   ;;  %v5387_v23 = vld [vmem:[%s6715_s5 + $0x60] sm:$0xff]  }
 0x25d   :  { %v4654_v26 = vpop.f32.mrb[11].mxu0 }
 0x25e   :  { %v4655_v27 = vadd.f32 %v4654_v26, %v4653_v25  ;;  %v877_v37 = vadd.f32 %v4652_v24, %v4356_v34  ;;  %v5396_v24 = vld [vmem:[%s6715_s5 + $0xe0] sm:$0xff]  }
 0x25f   :  { %v5389_v25 = vld [vmem:[%s6715_s5 + $0x20] sm:$0xff]  }
 0x260   :  { %v880_v41 = vadd.f32 %v4655_v27, %v4356_v34  ;;  %v5398_v26 = vld [vmem:[%s6715_s5 + $0xa0] sm:$0xff]   ;;  %v5391_v27 = vld [vmem:[%s6715_s5 + $0x68] sm:$0xff]  }
 0x262   :  { %v4656_v28 = vpop.f32.mrb[12].mxu0 }
 0x263   :  { %v4657_v29 = vpop.f32.mrb[13].mxu0 }
 0x264   :  { %v4658_v30 = vadd.f32 %v4657_v29, %v4656_v28  ;;  %v4659_v31 = vpop.f32.mrb[14].mxu0  ;;  %v5393_v28 = vld [vmem:[%s6715_s5 + $0x28] sm:$0xff]   ;;  %v5395_v29 = vld [vmem:[%s6715_s5 + $0x70] sm:$0xff]  }
 0x265   :  { %v4660_v32 = vpop.f32.mrb[15].mxu0 }
 0x266   :  { %v4661_v33 = vadd.f32 %v4660_v32, %v4659_v31  ;;  %v885_v49 = vadd.f32 %v4658_v30, %v4356_v34  ;;  %v5397_v30 = vld [vmem:[%s6715_s5 + $0x30] sm:$0xff]   ;;  %v5399_v31 = vld [vmem:[%s6715_s5 + $0x78] sm:$0xff]   ;;  %v5400_v32 = vld [vmem:[%s6715_s5 + $0xe8] sm:$0xff]  }
 0x268   :  { %v888_v56 = vadd.f32 %v4661_v33, %v4356_v34  ;;  %v5401_v33 = vld [vmem:[%s6715_s5 + $0x38] sm:$0xff]   ;;  %v5402_v34 = vld [vmem:[%s6715_s5 + $0xa8] sm:$0xff]  }
 0x26a   :  { %v4678_v35 = vpop.f32.mrb[8].mxu1 }
 0x26b   :  { %v4679_v36 = vpop.f32.mrb[9].mxu1 }
 0x26c   :  { %v4680_v38 = vadd.f32 %v4679_v36, %v4678_v35  ;;  %v4681_v39 = vpop.f32.mrb[10].mxu1  ;;  %v5403_v35 = vld [vmem:[%s6715_s5 + $0xf0] sm:$0xff]  }
 0x26d   :  { %v4682_v40 = vpop.f32.mrb[11].mxu1  ;;  %v5404_v36 = vld [vmem:[%s6715_s5 + $0xb0] sm:$0xff]  }
 0x26e   :  { %v926_v42 = vadd.f32 %v4680_v38, %v877_v37  ;;  %v4683_v43 = vadd.f32 %v4682_v40, %v4681_v39  ;;  %v5405_v37 = vld [vmem:[%s6715_s5 + $0xf8] sm:$0xff]  }
 0x26f   :  { %v5406_v38 = vld [vmem:[%s6715_s5 + $0xb8] sm:$0xff]   ;;  %s5712_s5 = smov 32  }
 0x270   :  { %v944_v44 = vmul.f32 0.2, %v926_v42  ;;  %v929_v45 = vadd.f32 %v4683_v43, %v880_v41  ;;  %vm940_vm2 = vcmp.gt.f32.partialorder %v926_v42, 0.0 }
 0x272   :  { %vm941_vm3 = vcmp.gt.f32.partialorder %v929_v45, 0.0  ;;  %v945_v46 = vmul.f32 0.2, %v929_v45  ;;  %v4684_v47 = vpop.f32.mrb[12].mxu1  ;;  %v948_v50 = vsel %vm940_vm2, %v926_v42, %v944_v44 }
 0x273   :  { %v4685_v48 = vpop.f32.mrb[13].mxu1 }
 0x274   :  { %v949_v51 = vsel %vm941_vm3, %v929_v45, %v945_v46  ;;  %v4686_v52 = vadd.f32 %v4685_v48, %v4684_v47  ;;  %v4687_v53 = vpop.f32.mrb[14].mxu1 }
 0x275   :  { %v5283_v54 = vpack.c.bf16 %v949_v51, %v948_v50  ;;  %v4688_v55 = vpop.f32.mrb[15].mxu1 }
 0x276   :  { %v934_v57 = vadd.f32 %v4686_v52, %v885_v49  ;;  %v4689_v58 = vadd.f32 %v4688_v55, %v4687_v53 }
 0x277   :  { %5284 = vmatprep.subr.bf16.mxu0 %v5283_v54  ;;  %5292 = vmatprep.subr.bf16.mxu1 %v5283_v54 }
 0x278   :  { %v946_v59 = vmul.f32 0.2, %v934_v57  ;;  %v937_v60 = vadd.f32 %v4689_v58, %v888_v56  ;;  %5286 = vmatpush3.bf16.msra.mxu0 %v5283_v54  ;;  %5294 = vmatpush3.bf16.msra.mxu1 %v5283_v54  ;;  %vm942_vm4 = vcmp.gt.f32.partialorder %v934_v57, 0.0 }
 0x27a   :  { %vm943_vm5 = vcmp.gt.f32.partialorder %v937_v60, 0.0  ;;  %v947_v61 = vmul.f32 0.2, %v937_v60  ;;  %v950_v62 = vsel %vm942_vm4, %v934_v57, %v946_v59  ;;  %v4397_v57 = vld [vmem:[#allocation7] ss:$0 sm:$0xff] }
 0x27c   :  { %v951_v63 = vsel %vm943_vm5, %v937_v60, %v947_v61 }
 0x27d   :  { %v5287_v0 = vpack.c.bf16 %v951_v63, %v950_v62 }
 0x27f   :  { %5288 = vmatprep.subr.bf16.mxu0 %v5287_v0  ;;  %5296 = vmatprep.subr.bf16.mxu1 %v5287_v0 }
 0x280   :  { %5290 = vmatpush3.bf16.msra.mxu0 %v5287_v0  ;;  %5298 = vmatpush3.bf16.msra.mxu1 %v5287_v0 }
 0x281   :  { %5300 = vmatprep.subr.bf16.mxu0 %v5283_v54  ;;  %5308 = vmatprep.subr.bf16.mxu1 %v5283_v54 }
 0x283   :  { %5057 = vmatmul.mubr.msk.f32.vlgmr.msra.gmra.mrb[16].mxu1 %vm955_vm1, %v1039_v1  ;;  %5046 = vmatmul.mubr.msk.f32.vlgmr.msra.gmra.mrb[16].mxu0 %vm955_vm1, %v954_v2 }
 0x284   :  { %5302 = vmatpush3.bf16.msra.mxu0 %v5283_v54  ;;  %5310 = vmatpush3.bf16.msra.mxu1 %v5283_v54 }
 0x285   :  { %5304 = vmatprep.subr.bf16.mxu0 %v5287_v0  ;;  %5312 = vmatprep.subr.bf16.mxu1 %v5287_v0 }
 0x286   :  { %5067 = vmatprep.mubr.msk.f32.mxu0 %vm955_vm1, %v1122_v3  ;;  %5078 = vmatprep.mubr.msk.f32.mxu1 %vm955_vm1, %v1206_v4 }
 0x288   :  { %5306 = vmatpush3.bf16.msra.mxu0 %v5287_v0  ;;  %5314 = vmatpush3.bf16.msra.mxu1 %v5287_v0 }
 0x289   :  { %4714 = vmatprep.subr.bf16.mxu0 %v5375_v5  ;;  %4736 = vmatprep.subr.bf16.mxu1 %v5380_v6 }
 0x28b   :  { %5068 = vmatmul.mubr.msk.f32.vlgmr.msra.gmra.mrb[18].mxu0 %vm955_vm1, %v1123_v7  ;;  %5079 = vmatmul.mubr.msk.f32.vlgmr.msra.gmra.mrb[18].mxu1 %vm955_vm1, %v1207_v8 }
 0x28c   :  { %4715 = vmatpush3.bf16.msra.mxu0 %v5376_v9  ;;  %4737 = vmatpush3.bf16.msra.mxu1 %v5382_v10 }
 0x28d   :  { %4716 = vmatprep.subr.bf16.mxu0 %v5377_v11  ;;  %4738 = vmatprep.subr.bf16.mxu1 %v5384_v12 }
 0x290   :  { %4717 = vmatpush3.bf16.msra.mxu0 %v5378_v13  ;;  %4739 = vmatpush3.bf16.msra.mxu1 %v5386_v14 }
 0x291   :  { %4718 = vmatprep.subr.bf16.mxu0 %v5379_v15  ;;  %4740 = vmatprep.subr.bf16.mxu1 %v5388_v16  ;;  %v1652_v15 = vlaneseq }
 0x293   :  { %v1653_v16 = vshrl.u32 %v1652_v15, 7  ;;  %v5423_v15 = vld [vmem:[%s6718_s8 + $0x20] sm:$0xff]  }
 0x294   :  { %4719 = vmatpush3.bf16.msra.mxu0 %v5381_v17  ;;  %4741 = vmatpush3.bf16.msra.mxu1 %v5390_v18 }
 0x295   :  { %4720 = vmatprep.subr.bf16.mxu0 %v5383_v19  ;;  %4742 = vmatprep.subr.bf16.mxu1 %v5392_v20  ;;  %v6173_v18 = vsub.s32 0, %v1653_v16  ;;  %v5428_v16 = vld [vmem:[%s6718_s8 + $0xa0] sm:$0xff]  }
 0x298   :  { %4721 = vmatpush3.bf16.msra.mxu0 %v5385_v21  ;;  %4743 = vmatpush3.bf16.msra.mxu1 %v5394_v22 }
 0x299   :  { %4722 = vmatprep.subr.bf16.mxu0 %v5387_v23  ;;  %4744 = vmatprep.subr.bf16.mxu1 %v5396_v24 }
 0x29c   :  { %4723 = vmatpush3.bf16.msra.mxu0 %v5389_v25  ;;  %4745 = vmatpush3.bf16.msra.mxu1 %v5398_v26 }
 0x29d   :  { %4724 = vmatprep.subr.bf16.mxu0 %v5391_v27  ;;  %4746 = vmatprep.subr.bf16.mxu1 %v5400_v32 }
 0x2a0   :  { %4725 = vmatpush3.bf16.msra.mxu0 %v5393_v28  ;;  %4747 = vmatpush3.bf16.msra.mxu1 %v5402_v34 }
 0x2a1   :  { %4726 = vmatprep.subr.bf16.mxu0 %v5395_v29  ;;  %4748 = vmatprep.subr.bf16.mxu1 %v5403_v35 }
 0x2a4   :  { %4727 = vmatpush3.bf16.msra.mxu0 %v5397_v30  ;;  %4749 = vmatpush3.bf16.msra.mxu1 %v5404_v36 }
 0x2a5   :  { %4728 = vmatprep.subr.bf16.mxu0 %v5399_v31  ;;  %4750 = vmatprep.subr.bf16.mxu1 %v5405_v37  ;;  %v5714_v37 = vmov 0.0|0.0  }
 0x2a8   :  { %4729 = vmatpush3.bf16.msra.mxu0 %v5401_v33  ;;  %4751 = vmatpush3.bf16.msra.mxu1 %v5406_v38  ;;  %v5716_v38 = vmov 0.0  }
 0x2a9   :  { %5315 = vmatprep.subr.bf16.mxu0 %v5714_v37  ;;  %5318 = vmatprep.subr.bf16.mxu1 %v5714_v37 }
 0x356   :  { %v5058_v39 = vpop.f32.mrb[16].mxu1  ;;  %v5047_v40 = vpop.f32.mrb[16].mxu0 }
 0x357   :  { %v1112_v41 = vpop.f32.mrb[17].mxu1  ;;  %v1028_v42 = vpop.f32.mrb[17].mxu0 }
 0x358   :  { %v1290_v43 = vpack.c.bf16 %v5058_v39, %v1112_v41  ;;  %v1289_v44 = vpack.c.bf16 %v5047_v40, %v1028_v42 }
 0x35a   :  { %1585 = vmatprep.mubr.bf16.mxu0 %v1290_v43  ;;  %v1677_v43 = vld [vmem:[#allocation7 + $0x1] sm:$0x1] }
 0x35b   :  { %1586 = vmatmul.mubr.bf16.vlgmr.msra.gmra.mrb[20].mxu0 %v1289_v44 }
 0x35c   :  { %5085 = vmatprep.mubr.msk.f32.mxu0 %vm5715_vm6, %v5716_v38 }
 0x35e   :  { %v5069_v45 = vpop.f32.mrb[18].mxu0  ;;  %v5080_v46 = vpop.f32.mrb[18].mxu1 }
 0x35f   :  { %v1196_v47 = vpop.f32.mrb[19].mxu0  ;;  %v1280_v48 = vpop.f32.mrb[19].mxu1 }
 0x360   :  { %v1291_v49 = vpack.c.bf16 %v5069_v45, %v1196_v47  ;;  %v1292_v50 = vpack.c.bf16 %v5080_v46, %v1280_v48  ;;  %v4430_v47 = vld [vmem:[#allocation7 + $0x2] ss:$0 sm:$0xff] }
 0x362   :  { %1626 = vmatprep.mubr.bf16.mxu1 %v1292_v50 }
 0x363   :  { %1627 = vmatmul.mubr.bf16.vlgmr.msra.gmra.mrb[20].mxu1 %v1291_v49 }
 0x364   :  { %5092 = vmatprep.mubr.msk.f32.mxu1 %vm5715_vm6, %v5716_v38 }
 0x42e   :  { %v4730_v51 = vpop.f32.mrb[20].mxu0 }
 0x42f   :  { %v4731_v52 = vpop.f32.mrb[21].mxu0 }
 0x430   :  { %v4732_v53 = vadd.f32 %v4731_v52, %v4730_v51  ;;  %v4733_v54 = vpop.f32.mrb[22].mxu0 }
 0x431   :  { %v4734_v55 = vpop.f32.mrb[23].mxu0 }
 0x432   :  { %v4735_v56 = vadd.f32 %v4734_v55, %v4733_v54  ;;  %v1588_v60 = vadd.f32 %v4732_v53, %v4397_v57 }
 0x434   :  { %v1591_v0 = vadd.f32 %v4735_v56, %v4397_v57  ;;  %v1701_v57 = vld [vmem:[#allocation9] sm:$0xff] }
 0x436   :  { %v4752_v58 = vpop.f32.mrb[20].mxu1 }
 0x437   :  { %v4753_v59 = vpop.f32.mrb[21].mxu1 }
 0x438   :  { %v4754_v61 = vadd.f32 %v4753_v59, %v4752_v58  ;;  %v4755_v62 = vpop.f32.mrb[22].mxu1  ;;  %v1777_v58 = vld [vmem:[#allocation9 + $0x8] sm:$0xff]  ;;  %v5407_v59 = vld [vmem:[%s6718_s8 + $0x40] sm:$0xff]  }
 0x439   :  { %v4756_v63 = vpop.f32.mrb[23].mxu1 }
 0x43a   :  { %v1629_v1 = vadd.f32 %v4754_v61, %v1588_v60  ;;  %v4757_v2 = vadd.f32 %v4756_v63, %v4755_v62  ;;  %v5410_v60 = vld [vmem:[%s6718_s8 + $0xc0] sm:$0xff]   ;;  %v1852_v61 = vld [vmem:[#allocation9 + $0x10] sm:$0xff] }
 0x43b   :  { %v1927_v62 = vld [vmem:[#allocation9 + $0x18] sm:$0xff] }
 0x43c   :  { %v1632_v3 = vadd.f32 %v4757_v2, %v1591_v0  ;;  %v5408_v63 = vld [vmem:[%s6718_s8] sm:$0xff]   ;;  %v5414_v2 = vld [vmem:[%s6718_s8 + $0xc8] sm:$0xff]  }
 0x43d   :  { %v5412_v0 = vld [vmem:[%s6718_s8 + $0x80] sm:$0xff]  }
 0x43e   :  { %v1635_v4 = vadd.f32 %v1632_v3, %v1629_v1 }
 0x440   :  { %v1636_v5 = vrot.slane %v1635_v4, 4 }
 0x442   :  { %v1637_v6 = vadd.f32 %v1636_v5, %v1635_v4  ;;  %v5416_v4 = vld [vmem:[%s6718_s8 + $0x88] sm:$0xff]   ;;  %v5413_v5 = vld [vmem:[%s6718_s8 + $0x50] sm:$0xff]  }
 0x444   :  { %v1638_v7 = vrot.slane %v1637_v6, 2 }
 0x446   :  { %v1639_v8 = vadd.f32 %v1638_v7, %v1637_v6  ;;  %v5418_v6 = vld [vmem:[%s6718_s8 + $0xd0] sm:$0xff]  }
 0x447   :  { %v5415_v7 = vld [vmem:[%s6718_s8 + $0x10] sm:$0xff]  }
 0x448   :  { %v1640_v9 = vrot.slane %v1639_v8, 1 }
 0x44a   :  { %v1641_v10 = vadd.f32 %v1640_v9, %v1639_v8  ;;  %v5420_v8 = vld [vmem:[%s6718_s8 + $0x90] sm:$0xff]   ;;  %v5417_v9 = vld [vmem:[%s6718_s8 + $0x58] sm:$0xff]  }
 0x44c   :  { %1642 = vrot.lane.b32.xlu0 %v1641_v10, %s5710_s7 }
 0x4be   :  { %v1643_v11 = vpop.permute.xlu0 %1642 }
 0x4bf   :  { %v1644_v12 = vadd.f32 %v1643_v11, %v1641_v10  ;;  %v5422_v10 = vld [vmem:[%s6718_s8 + $0xd8] sm:$0xff]  }
 0x4c0   :  { %v5419_v11 = vld [vmem:[%s6718_s8 + $0x18] sm:$0xff]  }
 0x4c1   :  { %1645 = vrot.lane.b32.xlu0 %v1644_v12, %s5712_s5 }
 0x533   :  { %v1646_v13 = vpop.permute.xlu0 %1645 }
 0x534   :  { %v1647_v14 = vadd.f32 %v1646_v13, %v1644_v12  ;;  %v5424_v12 = vld [vmem:[%s6718_s8 + $0x98] sm:$0xff]   ;;  %v5421_v13 = vld [vmem:[%s6718_s8 + $0x60] sm:$0xff]  }
 0x536   :  { %1648 = vrot.lane.b32.xlu1 %v1647_v14, %s5713_s3 }
 0x5a8   :  { %v1649_v17 = vpop.permute.xlu1 %1648 }
 0x5a9   :  { %v1650_v19 = vadd.f32 %v1649_v17, %v1647_v14  ;;  %v5426_v14 = vld [vmem:[%s6718_s8 + $0xe0] sm:$0xff]   ;;  %v5425_v17 = vld [vmem:[%s6718_s8 + $0x68] sm:$0xff]  }
 0x5ab   :  { %v1651_v20 = vmul.f32 0.0078125, %v1650_v19  ;;  %v5430_v19 = vld [vmem:[%s6718_s8 + $0xe8] sm:$0xff]  }
 0x5ad   :  { %v1655_v21 = vrot.slane %v1651_v20, %v6173_v18  ;;  %v5427_v20 = vld [vmem:[%s6718_s8 + $0x28] sm:$0xff]  }
 0x5af   :  { %v1656_v22 = vsub.f32 %v1629_v1, %v1655_v21  ;;  %v1657_v23 = vsub.f32 %v1632_v3, %v1655_v21  ;;  %v5409_v1 = vld [vmem:[%s6718_s8 + $0x48] sm:$0xff]  }
 0x5b0   :  { %v5411_v3 = vld [vmem:[%s6718_s8 + $0x8] sm:$0xff]  }
 0x5b1   :  { %v1658_v24 = vmul.f32 %v1656_v22, %v1656_v22  ;;  %v1659_v25 = vmul.f32 %v1657_v23, %v1657_v23  ;;  %v5432_v21 = vld [vmem:[%s6718_s8 + $0xa8] sm:$0xff]  }
 0x5b3   :  { %v1660_v26 = vadd.f32 %v1659_v25, %v1658_v24  ;;  %v5433_v24 = vld [vmem:[%s6718_s8 + $0x78] sm:$0xff]   ;;  %v5434_v25 = vld [vmem:[%s6718_s8 + $0xf0] sm:$0xff]  }
 0x5b5   :  { %v1661_v27 = vrot.slane %v1660_v26, 4 }
 0x5b7   :  { %v1662_v28 = vadd.f32 %v1661_v27, %v1660_v26  ;;  %v5435_v26 = vld [vmem:[%s6718_s8 + $0x38] sm:$0xff]   ;;  %v5436_v27 = vld [vmem:[%s6718_s8 + $0xb0] sm:$0xff]  }
 0x5b9   :  { %v1663_v29 = vrot.slane %v1662_v28, 2 }
 0x5bb   :  { %v1664_v30 = vadd.f32 %v1663_v29, %v1662_v28  ;;  %v5437_v28 = vld [vmem:[%s6718_s8 + $0xf8] sm:$0xff]  }
 0x5bc   :  { %v5438_v29 = vld [vmem:[%s6718_s8 + $0xb8] sm:$0xff]  }
 0x5bd   :  { %v1665_v31 = vrot.slane %v1664_v30, 1 }
 0x5bf   :  { %v1666_v32 = vadd.f32 %v1665_v31, %v1664_v30 }
 0x5c1   :  { %1667 = vrot.lane.b32.xlu1 %v1666_v32, %s5710_s7 }
 0x633   :  { %v1668_v33 = vpop.permute.xlu1 %1667 }
 0x634   :  { %v1669_v34 = vadd.f32 %v1668_v33, %v1666_v32 }
 0x636   :  { %1670 = vrot.lane.b32.xlu0 %v1669_v34, %s5712_s5 }
 0x6a8   :  { %v1671_v35 = vpop.permute.xlu0 %1670 }
 0x6a9   :  { %v1672_v36 = vadd.f32 %v1671_v35, %v1669_v34 }
 0x6ab   :  { %1673 = vrot.lane.b32.xlu1 %v1672_v36, %s5713_s3 }
 0x71d   :  { %v1674_v39 = vpop.permute.xlu1 %1673 }
 0x71e   :  { %v1675_v40 = vadd.f32 %v1674_v39, %v1672_v36 }
 0x720   :  { %v1676_v41 = vmul.f32 0.0078125, %v1675_v40 }
 0x722   :  { %v1678_v42 = vadd.f32 1e-05, %v1676_v41 }
 0x724   :  { %5527 = vrsqrt.f32 %v1678_v42 }
 0x72e   :  { %v5528_v44 = vpop.eup %5527 }
 0x72f   :  { %v1680_v45 = vmul.f32 %v5528_v44, %v1677_v43 }
 0x731   :  { %v1684_v46 = vrot.slane %v1680_v45, %v6173_v18 }
 0x733   :  { %v1685_v48 = vmul.f32 %v1684_v46, %v1656_v22  ;;  %v1686_v49 = vmul.f32 %v1684_v46, %v1657_v23  ;;  %v5429_v22 = vld [vmem:[%s6718_s8 + $0x70] sm:$0xff]  }
 0x734   :  { %v5431_v23 = vld [vmem:[%s6718_s8 + $0x30] sm:$0xff]   ;;  %s6747_s8 = sld [smem:[#allocation22_spill]] }
 0x735   :  { %v1692_v50 = vadd.f32 %v4430_v47, %v1685_v48  ;;  %v1693_v51 = vadd.f32 %v4430_v47, %v1686_v49  ;;  %v4435_v47 = vld [vmem:[#allocation10] ss:$0 sm:$0xff] }
 0x737   :  { %vm1694_vm7 = vcmp.gt.f32.partialorder %v1692_v50, 0.0  ;;  %vm1695_vm8 = vcmp.gt.f32.partialorder %v1693_v51, 0.0  ;;  %v1696_v52 = vmul.f32 0.2, %v1692_v50  ;;  %v1697_v53 = vmul.f32 0.2, %v1693_v51 }
 0x739   :  { %v1698_v54 = vsel %vm1694_vm7, %v1692_v50, %v1696_v52  ;;  %v1699_v55 = vsel %vm1695_vm8, %v1693_v51, %v1697_v53 }
 0x73a   :  { %v5316_v56 = vpack.c.bf16 %v1699_v55, %v1698_v54 }
 0x73c   :  { %5317 = vmatpush3.bf16.msra.mxu0 %v5316_v56  ;;  %5320 = vmatpush3.bf16.msra.mxu1 %v5316_v56 }
 0x73d   :  { %5321 = vmatprep.subr.bf16.mxu0 %v5714_v37  ;;  %5324 = vmatprep.subr.bf16.mxu1 %v5714_v37 }
 0x73f   :  { %5086 = vmatmul.mubr.msk.f32.vlgmr.msra.gmra.mrb[24].mxu0 %vm1702_vm9, %v1701_v57  ;;  %5093 = vmatmul.mubr.msk.f32.vlgmr.msra.gmra.mrb[24].mxu1 %vm1702_vm9, %v1777_v58 }
 0x740   :  { %5323 = vmatpush3.bf16.msra.mxu0 %v5316_v56  ;;  %5326 = vmatpush3.bf16.msra.mxu1 %v5316_v56 }
 0x741   :  { %5099 = vmatprep.mubr.msk.f32.mxu0 %vm5715_vm6, %v5716_v38  ;;  %5106 = vmatprep.mubr.msk.f32.mxu1 %vm5715_vm6, %v5716_v38 }
 0x742   :  { %4770 = vmatprep.subr.bf16.mxu0 %v5407_v59  ;;  %4792 = vmatprep.subr.bf16.mxu1 %v5410_v60 }
 0x743   :  { %5100 = vmatmul.mubr.msk.f32.vlgmr.msra.gmra.mrb[26].mxu0 %vm1702_vm9, %v1852_v61  ;;  %5107 = vmatmul.mubr.msk.f32.vlgmr.msra.gmra.mrb[26].mxu1 %vm1702_vm9, %v1927_v62 }
 0x744   :  { %4771 = vmatpush3.bf16.msra.mxu0 %v5408_v63  ;;  %4793 = vmatpush3.bf16.msra.mxu1 %v5412_v0 }
 0x745   :  { %4772 = vmatprep.subr.bf16.mxu0 %v5409_v1  ;;  %4794 = vmatprep.subr.bf16.mxu1 %v5414_v2 }
 0x748   :  { %4773 = vmatpush3.bf16.msra.mxu0 %v5411_v3  ;;  %4795 = vmatpush3.bf16.msra.mxu1 %v5416_v4 }
 0x749   :  { %4774 = vmatprep.subr.bf16.mxu0 %v5413_v5  ;;  %4796 = vmatprep.subr.bf16.mxu1 %v5418_v6 }
 0x74c   :  { %4775 = vmatpush3.bf16.msra.mxu0 %v5415_v7  ;;  %4797 = vmatpush3.bf16.msra.mxu1 %v5420_v8 }
 0x74d   :  { %4776 = vmatprep.subr.bf16.mxu0 %v5417_v9  ;;  %4798 = vmatprep.subr.bf16.mxu1 %v5422_v10 }
 0x750   :  { %4777 = vmatpush3.bf16.msra.mxu0 %v5419_v11  ;;  %4799 = vmatpush3.bf16.msra.mxu1 %v5424_v12 }
 0x751   :  { %4778 = vmatprep.subr.bf16.mxu0 %v5421_v13  ;;  %4800 = vmatprep.subr.bf16.mxu1 %v5426_v14 }
 0x754   :  { %4779 = vmatpush3.bf16.msra.mxu0 %v5423_v15  ;;  %4801 = vmatpush3.bf16.msra.mxu1 %v5428_v16 }
 0x755   :  { %4780 = vmatprep.subr.bf16.mxu0 %v5425_v17  ;;  %4802 = vmatprep.subr.bf16.mxu1 %v5430_v19  ;;  %v2377_v19 = vld [vmem:[#allocation10 + $0x1] sm:$0x1] }
 0x758   :  { %4781 = vmatpush3.bf16.msra.mxu0 %v5427_v20  ;;  %4803 = vmatpush3.bf16.msra.mxu1 %v5432_v21 }
 0x759   :  { %4782 = vmatprep.subr.bf16.mxu0 %v5429_v22  ;;  %4804 = vmatprep.subr.bf16.mxu1 %v5434_v25 }
 0x75c   :  { %4783 = vmatpush3.bf16.msra.mxu0 %v5431_v23  ;;  %4805 = vmatpush3.bf16.msra.mxu1 %v5436_v27  ;;  %v4468_v23 = vld [vmem:[#allocation10 + $0x2] ss:$0 sm:$0xff]  ;;  %v4470_v27 = vld [vmem:[%s6720_s10 + $0x4] sm:$0xf] }
 0x75d   :  { %4784 = vmatprep.subr.bf16.mxu0 %v5433_v24  ;;  %4806 = vmatprep.subr.bf16.mxu1 %v5437_v28  ;;  %v4472_v28 = vld [vmem:[%s6720_s10 + $0x8] sm:$0xf] }
 0x760   :  { %4785 = vmatpush3.bf16.msra.mxu0 %v5435_v26  ;;  %4807 = vmatpush3.bf16.msra.mxu1 %v5438_v29  ;;  %v2393_v26 = vld [vmem:[%s6720_s10] sm:$0xf]  ;;  %v4474_v29 = vld [vmem:[%s6720_s10 + $0xc] sm:$0xf] }
 0x761   :  { %5109 = vmatprep.subr.mxu0 %v5716_v38  ;;  %5114 = vmatprep.subr.mxu1 %v5716_v38 }
 0x812   :  { %v1772_v30 = vpop.f32.mrb[24].mxu0  ;;  %v1847_v31 = vpop.f32.mrb[24].mxu1 }
 0x813   :  { %v2001_v32 = vpack.c.bf16 %v1772_v30, %v1772_v30  ;;  %v2002_v33 = vpack.c.bf16 %v1847_v31, %v1847_v31  ;;  %v5087_v34 = vpop.f32.mrb[25].mxu0  ;;  %v5094_v35 = vpop.f32.mrb[25].mxu1  ;;  %v5439_v30 = vld [vmem:[%s6721_s11 + $0x40] sm:$0xff]  }
 0x814   :  { %v5442_v31 = vld [vmem:[%s6721_s11 + $0xc0] sm:$0xff]   ;;  %v5441_v34 = vld [vmem:[%s6721_s11 + $0x48] sm:$0xff]  }
 0x815   :  { %2297 = vmatprep.mubr.bf16.mxu0 %v2002_v33  ;;  %v5444_v33 = vld [vmem:[%s6721_s11 + $0x80] sm:$0xff]   ;;  %v5446_v35 = vld [vmem:[%s6721_s11 + $0xc8] sm:$0xff]  }
 0x816   :  { %v1922_v36 = vpop.f32.mrb[26].mxu0  ;;  %v1997_v37 = vpop.f32.mrb[26].mxu1  ;;  %2298 = vmatmul.mubr.bf16.vlgmr.msra.gmra.mrb[28].mxu0 %v2001_v32  ;;  %v5440_v32 = vld [vmem:[%s6721_s11] sm:$0xff]  }
 0x817   :  { %v2003_v39 = vpack.c.bf16 %v1922_v36, %v1922_v36  ;;  %v2004_v40 = vpack.c.bf16 %v1997_v37, %v1997_v37  ;;  %v5101_v41 = vpop.f32.mrb[27].mxu0  ;;  %v5108_v42 = vpop.f32.mrb[27].mxu1  ;;  %5111 = vmatprep.mubr.msk.f32.mxu0 %vm5715_vm6, %v5716_v38  ;;  %v5443_v36 = vld [vmem:[%s6721_s11 + $0x8] sm:$0xff]  }
 0x818   :  { %v5448_v37 = vld [vmem:[%s6721_s11 + $0x88] sm:$0xff]   ;;  %v5447_v41 = vld [vmem:[%s6721_s11 + $0x10] sm:$0xff]  }
 0x819   :  { %2337 = vmatprep.mubr.bf16.mxu1 %v2004_v40  ;;  %v5450_v40 = vld [vmem:[%s6721_s11 + $0xd0] sm:$0xff]  }
 0x81a   :  { %2338 = vmatmul.mubr.bf16.vlgmr.msra.gmra.mrb[28].mxu1 %v2003_v39  ;;  %v5445_v39 = vld [vmem:[%s6721_s11 + $0x50] sm:$0xff]  }
 0x81b   :  { %5116 = vmatprep.mubr.msk.f32.mxu1 %vm5715_vm6, %v5716_v38  ;;  %v5452_v42 = vld [vmem:[%s6721_s11 + $0x90] sm:$0xff]  }
 0x8e9   :  { %v4786_v43 = vpop.f32.mrb[28].mxu0 }
 0x8ea   :  { %v4787_v44 = vpop.f32.mrb[29].mxu0 }
 0x8eb   :  { %v4788_v45 = vadd.f32 %v4787_v44, %v4786_v43  ;;  %v4789_v46 = vpop.f32.mrb[30].mxu0  ;;  %v5449_v43 = vld [vmem:[%s6721_s11 + $0x58] sm:$0xff]  }
 0x8ec   :  { %v4790_v48 = vpop.f32.mrb[31].mxu0  ;;  %v5454_v44 = vld [vmem:[%s6721_s11 + $0xd8] sm:$0xff]  }
 0x8ed   :  { %v4808_v49 = vpop.f32.mrb[28].mxu1  ;;  %v2300_v51 = vadd.f32 %v4788_v45, %v4435_v47  ;;  %v5451_v45 = vld [vmem:[%s6721_s11 + $0x18] sm:$0xff]   ;;  %v5453_v47 = vld [vmem:[%s6721_s11 + $0x60] sm:$0xff]  }
 0x8ee   :  { %v4809_v50 = vpop.f32.mrb[29].mxu1  ;;  %v5456_v46 = vld [vmem:[%s6721_s11 + $0x98] sm:$0xff]   ;;  %v5458_v48 = vld [vmem:[%s6721_s11 + $0xe0] sm:$0xff]  }
 0x8ef   :  { %v4810_v52 = vadd.f32 %v4809_v50, %v4808_v49  ;;  %v4811_v53 = vpop.f32.mrb[30].mxu1  ;;  %v5455_v49 = vld [vmem:[%s6721_s11 + $0x20] sm:$0xff]  }
 0x8f0   :  { %v4812_v54 = vpop.f32.mrb[31].mxu1  ;;  %v5460_v50 = vld [vmem:[%s6721_s11 + $0xa0] sm:$0xff]   ;;  %v5459_v53 = vld [vmem:[%s6721_s11 + $0x28] sm:$0xff]  }
 0x8f1   :  { %v2340_v55 = vadd.f32 %v4810_v52, %v2300_v51  ;;  %v5457_v51 = vld [vmem:[%s6721_s11 + $0x68] sm:$0xff]  }
 0x8f2   :  { %v5462_v52 = vld [vmem:[%s6721_s11 + $0xe8] sm:$0xff]  }
 0x8f3   :  { %v2345_v56 = vrot.slane %v2340_v55, 4  ;;  %v5464_v54 = vld [vmem:[%s6721_s11 + $0xa8] sm:$0xff]  }
 0x8f5   :  { %v2346_v57 = vadd.f32 %v2345_v56, %v2340_v55  ;;  %v5463_v56 = vld [vmem:[%s6721_s11 + $0x30] sm:$0xff]  }
 0x8f7   :  { %v2347_v58 = vrot.slane %v2346_v57, 2 }
 0x8f9   :  { %v2348_v59 = vadd.f32 %v2347_v58, %v2346_v57  ;;  %v5465_v57 = vld [vmem:[%s6721_s11 + $0x78] sm:$0xff]   ;;  %v5466_v58 = vld [vmem:[%s6721_s11 + $0xf0] sm:$0xff]  }
 0x8fb   :  { %v2349_v60 = vrot.slane %v2348_v59, 1 }
 0x8fd   :  { %v2350_v61 = vadd.f32 %v2349_v60, %v2348_v59  ;;  %v5467_v59 = vld [vmem:[%s6721_s11 + $0x38] sm:$0xff]   ;;  %v5468_v60 = vld [vmem:[%s6721_s11 + $0xb0] sm:$0xff]  }
 0x8ff   :  { %2351 = vrot.lane.b32.xlu0 %v2350_v61, %s5710_s7 }
 0x971   :  { %v2352_v62 = vpop.permute.xlu0 %2351 }
 0x972   :  { %v2353_v63 = vadd.f32 %v2352_v62, %v2350_v61  ;;  %v5469_v61 = vld [vmem:[%s6721_s11 + $0xf8] sm:$0xff]  }
 0x973   :  { %v5470_v62 = vld [vmem:[%s6721_s11 + $0xb8] sm:$0xff]  }
 0x974   :  { %2354 = vrot.lane.b32.xlu1 %v2353_v63, %s5712_s5 }
 0x9e6   :  { %v2355_v0 = vpop.permute.xlu1 %2354 }
 0x9e7   :  { %v2356_v1 = vadd.f32 %v2355_v0, %v2353_v63 }
 0x9e9   :  { %v2357_v2 = vmul.f32 0.03125, %v2356_v1 }
 0x9eb   :  { %v2361_v3 = vrot.slane %v2357_v2, %v6173_v18 }
 0x9ed   :  { %v2362_v4 = vsub.f32 %v2340_v55, %v2361_v3  ;;  %v5461_v55 = vld [vmem:[%s6721_s11 + $0x70] sm:$0xff]  }
 0x9ef   :  { %v2363_v5 = vmul.f32 %v2362_v4, %v2362_v4 }
 0x9f1   :  { %v2364_v6 = vrot.slane %v2363_v5, 4 }
 0x9f3   :  { %v2365_v7 = vadd.f32 %v2364_v6, %v2363_v5 }
 0x9f5   :  { %v2366_v8 = vrot.slane %v2365_v7, 2 }
 0x9f7   :  { %v2367_v9 = vadd.f32 %v2366_v8, %v2365_v7 }
 0x9f9   :  { %v2368_v10 = vrot.slane %v2367_v9, 1 }
 0x9fb   :  { %v2369_v11 = vadd.f32 %v2368_v10, %v2367_v9 }
 0x9fd   :  { %2370 = vrot.lane.b32.xlu0 %v2369_v11, %s5710_s7 }
 0xa6f   :  { %v2371_v12 = vpop.permute.xlu0 %2370 }
 0xa70   :  { %v2372_v13 = vadd.f32 %v2371_v12, %v2369_v11 }
 0xa72   :  { %2373 = vrot.lane.b32.xlu1 %v2372_v13, %s5712_s5 }
 0xae4   :  { %v2374_v14 = vpop.permute.xlu1 %2373 }
 0xae5   :  { %v2375_v15 = vadd.f32 %v2374_v14, %v2372_v13 }
 0xae7   :  { %v2376_v16 = vmul.f32 0.03125, %v2375_v15  ;;  %v4476_v15 = vld [vmem:[%s6722_s12] ss:$0 sm:$0xff] }
 0xae9   :  { %v2378_v17 = vadd.f32 1e-05, %v2376_v16 }
 0xaeb   :  { %5529 = vrsqrt.f32 %v2378_v17 }
 0xaf5   :  { %v5530_v20 = vpop.eup %5529 }
 0xaf6   :  { %v2380_v21 = vmul.f32 %v5530_v20, %v2377_v19 }
 0xaf8   :  { %v2384_v22 = vrot.slane %v2380_v21, %v6173_v18 }
 0xafa   :  { %v2385_v24 = vmul.f32 %v2384_v22, %v2362_v4 }
 0xafc   :  { %v2391_v25 = vadd.f32 %v4468_v23, %v2385_v24 }
 0xafe   :  { %5110 = vmatpush3.msra.mxu0 %v2391_v25  ;;  %5115 = vmatpush3.msra.mxu1 %v2391_v25 }
 0xaff   :  { %5112 = vmatmul.mubr.msk.f32.vlgmr.msra.gmra.mrb[32].mxu0 %vm2394_vm10, %v2393_v26  ;;  %5117 = vmatmul.mubr.msk.f32.vlgmr.msra.gmra.mrb[32].mxu1 %vm2394_vm10, %v4470_v27 }
 0xb00   :  { %5119 = vmatprep.subr.mxu0 %v5716_v38  ;;  %5124 = vmatprep.subr.mxu1 %v5716_v38 }
 0xb01   :  { %5120 = vmatpush3.msra.mxu0 %v2391_v25  ;;  %5125 = vmatpush3.msra.mxu1 %v2391_v25 }
 0xb02   :  { %5121 = vmatprep.mubr.msk.f32.mxu0 %vm5715_vm6, %v5716_v38  ;;  %5126 = vmatprep.mubr.msk.f32.mxu1 %vm5715_vm6, %v5716_v38 }
 0xb03   :  { %5122 = vmatmul.mubr.msk.f32.vlgmr.msra.gmra.mrb[34].mxu0 %vm2394_vm10, %v4472_v28  ;;  %5127 = vmatmul.mubr.msk.f32.vlgmr.msra.gmra.mrb[34].mxu1 %vm2394_vm10, %v4474_v29 }
 0xb04   :  { %4822 = vmatprep.subr.bf16.mxu0 %v5439_v30  ;;  %4844 = vmatprep.subr.bf16.mxu1 %v5442_v31 }
 0xb05   :  { %4823 = vmatpush3.bf16.msra.mxu0 %v5440_v32  ;;  %4845 = vmatpush3.bf16.msra.mxu1 %v5444_v33  ;;  %v5471_v32 = vld [vmem:[#allocation12] sm:$0xff]  }
 0xb06   :  { %4824 = vmatprep.subr.bf16.mxu0 %v5441_v34  ;;  %4846 = vmatprep.subr.bf16.mxu1 %v5446_v35 }
 0xb09   :  { %4825 = vmatpush3.bf16.msra.mxu0 %v5443_v36  ;;  %4847 = vmatpush3.bf16.msra.mxu1 %v5448_v37 }
 0xb0a   :  { %4826 = vmatprep.subr.bf16.mxu0 %v5445_v39  ;;  %4848 = vmatprep.subr.bf16.mxu1 %v5450_v40  ;;  %v5472_v40 = vld [vmem:[#allocation12 + $0x8] sm:$0xff]  }
 0xb0d   :  { %4827 = vmatpush3.bf16.msra.mxu0 %v5447_v41  ;;  %4849 = vmatpush3.bf16.msra.mxu1 %v5452_v42 }
 0xb0e   :  { %4828 = vmatprep.subr.bf16.mxu0 %v5449_v43  ;;  %4850 = vmatprep.subr.bf16.mxu1 %v5454_v44  ;;  %v5473_v44 = vld [vmem:[#allocation12 + $0x10] sm:$0xff]  }
 0xb11   :  { %4829 = vmatpush3.bf16.msra.mxu0 %v5451_v45  ;;  %4851 = vmatpush3.bf16.msra.mxu1 %v5456_v46 }
 0xb12   :  { %4830 = vmatprep.subr.bf16.mxu0 %v5453_v47  ;;  %4852 = vmatprep.subr.bf16.mxu1 %v5458_v48  ;;  %v5474_v47 = vld [vmem:[#allocation12 + $0x18] sm:$0xff]  }
 0xb15   :  { %4831 = vmatpush3.bf16.msra.mxu0 %v5455_v49  ;;  %4853 = vmatpush3.bf16.msra.mxu1 %v5460_v50  ;;  %v5475_v50 = vld [vmem:[#allocation12 + $0x20] sm:$0xff]  }
 0xb16   :  { %4832 = vmatprep.subr.bf16.mxu0 %v5457_v51  ;;  %4854 = vmatprep.subr.bf16.mxu1 %v5462_v52  ;;  %v5476_v51 = vld [vmem:[#allocation12 + $0x28] sm:$0xff]   ;;  %v5477_v52 = vld [vmem:[#allocation12 + $0x30] sm:$0xff]  }
 0xb19   :  { %4833 = vmatpush3.bf16.msra.mxu0 %v5459_v53  ;;  %4855 = vmatpush3.bf16.msra.mxu1 %v5464_v54  ;;  %v5478_v53 = vld [vmem:[#allocation12 + $0x38] sm:$0xff]  }
 0xb1a   :  { %4834 = vmatprep.subr.bf16.mxu0 %v5461_v55  ;;  %4856 = vmatprep.subr.bf16.mxu1 %v5466_v58  ;;  %v3066_v58 = vld [vmem:[%s6722_s12 + $0x1] sm:$0x1] }
 0xb1d   :  { %4835 = vmatpush3.bf16.msra.mxu0 %v5463_v56  ;;  %4857 = vmatpush3.bf16.msra.mxu1 %v5468_v60 }
 0xb1e   :  { %4836 = vmatprep.subr.bf16.mxu0 %v5465_v57  ;;  %4858 = vmatprep.subr.bf16.mxu1 %v5469_v61 }
 0xb21   :  { %4837 = vmatpush3.bf16.msra.mxu0 %v5467_v59  ;;  %4859 = vmatpush3.bf16.msra.mxu1 %v5470_v62  ;;  %v4509_v62 = vld [vmem:[%s6722_s12 + $0x2] ss:$0 sm:$0xff] }
 0xb22   :  { %5129 = vmatprep.subr.bf16.mxu0 %v5716_v38  ;;  %5149 = vmatprep.subr.mxu1 %v5716_v38 }
 0xbd2   :  { %v2464_v63 = vpop.f32.mrb[32].mxu0  ;;  %v2539_v0 = vpop.f32.mrb[32].mxu1 }
 0xbd3   :  { %v2693_v1 = vpack.c.bf16 %v2464_v63, %v2464_v63  ;;  %v2694_v2 = vpack.c.bf16 %v2539_v0, %v2539_v0  ;;  %v5113_v3 = vpop.f32.mrb[33].mxu0  ;;  %v5118_v4 = vpop.f32.mrb[33].mxu1 }
 0xbd5   :  { %2989 = vmatprep.mubr.bf16.mxu0 %v2694_v2  ;;  %v4510_v2 = vld [vmem:[%s6724_s14] ss:$0 sm:$0xff] }
 0xbd6   :  { %v2614_v5 = vpop.f32.mrb[34].mxu0  ;;  %v2689_v6 = vpop.f32.mrb[34].mxu1  ;;  %2990 = vmatmul.mubr.bf16.vlgmr.msra.gmra.mrb[36].mxu0 %v2693_v1 }
 0xbd7   :  { %v2695_v7 = vpack.c.bf16 %v2614_v5, %v2614_v5  ;;  %v2696_v8 = vpack.c.bf16 %v2689_v6, %v2689_v6  ;;  %v5123_v9 = vpop.f32.mrb[35].mxu0  ;;  %v5128_v10 = vpop.f32.mrb[35].mxu1  ;;  %5145 = vmatprep.mubr.msk.bf16.mxu0 %vm5715_vm6, %v5716_v38  ;;  %5130 = vmatpush3.bf16.msra.mxu0 %v5471_v32  ;;  %v5491_v32 = vld [vmem:[%s6726_s16 + $0x98] sm:$0xff]  }
 0xbd8   :  { %5131 = vmatprep.subr.bf16.mxu0 %v5716_v38 }
 0xbd9   :  { %3029 = vmatprep.mubr.bf16.mxu1 %v2696_v8 }
 0xbda   :  { %3030 = vmatmul.mubr.bf16.vlgmr.msra.gmra.mrb[36].mxu1 %v2695_v7 }
 0xbdb   :  { %5151 = vmatprep.mubr.msk.f32.mxu1 %vm5715_vm6, %v5716_v38  ;;  %5132 = vmatpush3.bf16.msra.mxu0 %v5472_v40 }
 0xbdc   :  { %5133 = vmatprep.subr.bf16.mxu0 %v5716_v38 }
 0xbdf   :  { %5134 = vmatpush3.bf16.msra.mxu0 %v5473_v44 }
 0xbe0   :  { %5135 = vmatprep.subr.bf16.mxu0 %v5716_v38 }
 0xbe3   :  { %5136 = vmatpush3.bf16.msra.mxu0 %v5474_v47  ;;  %v6490_v47 = vld [vmem:[%s6725_s15] sm:$0xf] }
 0xbe4   :  { %5137 = vmatprep.subr.bf16.mxu0 %v5716_v38 }
 0xbe7   :  { %5138 = vmatpush3.bf16.msra.mxu0 %v5475_v50  ;;  %v5479_v50 = vld [vmem:[%s6726_s16 + $0x40] sm:$0xff]  }
 0xbe8   :  { %5139 = vmatprep.subr.bf16.mxu0 %v5716_v38 }
 0xbeb   :  { %5140 = vmatpush3.bf16.msra.mxu0 %v5476_v51  ;;  %v6516_v51 = vld [vmem:[%s6725_s15 + $0x8] sm:$0xf] }
 0xbec   :  { %5141 = vmatprep.subr.bf16.mxu0 %v5716_v38 }
 0xbef   :  { %5142 = vmatpush3.bf16.msra.mxu0 %v5477_v52  ;;  %v5480_v52 = vld [vmem:[%s6726_s16] sm:$0xff]  }
 0xbf0   :  { %5143 = vmatprep.subr.bf16.mxu0 %v5716_v38 }
 0xbf3   :  { %5144 = vmatpush3.bf16.msra.mxu0 %v5478_v53  ;;  %v5481_v53 = vld [vmem:[%s6726_s16 + $0x48] sm:$0xff]  }
 0xbf4   :  { %5164 = vmatprep.subr.bf16.mxu0 %v5716_v38 }
 0xca9   :  { %v4838_v11 = vpop.f32.mrb[36].mxu0 }
 0xcaa   :  { %v4839_v12 = vpop.f32.mrb[37].mxu0 }
 0xcab   :  { %v4840_v13 = vadd.f32 %v4839_v12, %v4838_v11  ;;  %v4841_v14 = vpop.f32.mrb[38].mxu0 }
 0xcac   :  { %v4842_v16 = vpop.f32.mrb[39].mxu0 }
 0xcad   :  { %v4860_v17 = vpop.f32.mrb[36].mxu1  ;;  %v2992_v20 = vadd.f32 %v4840_v13, %v4476_v15 }
 0xcae   :  { %v4861_v19 = vpop.f32.mrb[37].mxu1 }
 0xcaf   :  { %v4862_v21 = vadd.f32 %v4861_v19, %v4860_v17  ;;  %v4863_v22 = vpop.f32.mrb[38].mxu1 }
 0xcb0   :  { %v4864_v23 = vpop.f32.mrb[39].mxu1 }
 0xcb1   :  { %v3032_v24 = vadd.f32 %v4862_v21, %v2992_v20 }
 0xcb3   :  { %v3038_v25 = vsel %vm3037_vm11, %v3032_v24, 0.0 }
 0xcb4   :  { %v3039_v26 = vrot.slane %v3038_v25, 4 }
 0xcb6   :  { %v3040_v27 = vadd.f32 %v3039_v26, %v3038_v25 }
 0xcb8   :  { %v3041_v28 = vrot.slane %v3040_v27, 2 }
 0xcba   :  { %v3042_v29 = vadd.f32 %v3041_v28, %v3040_v27 }
 0xcbc   :  { %v3043_v30 = vrot.slane %v3042_v29, 1 }
 0xcbe   :  { %v3044_v31 = vadd.f32 %v3043_v30, %v3042_v29  ;;  %v5482_v29 = vld [vmem:[%s6726_s16 + $0x80] sm:$0xff]   ;;  %v5485_v30 = vld [vmem:[%s6726_s16 + $0x88] sm:$0xff]  }
 0xcc0   :  { %3045 = vrot.lane.b32.xlu0 %v3044_v31, %s5710_s7 }
 0xd32   :  { %v3046_v33 = vpop.permute.xlu0 %3045 }
 0xd33   :  { %v3047_v34 = vadd.f32 %v3046_v33, %v3044_v31  ;;  %v5488_v31 = vld [vmem:[%s6726_s16 + $0x90] sm:$0xff]   ;;  %v5494_v33 = vld [vmem:[%s6726_s16 + $0xa0] sm:$0xff]  }
 0xd35   :  { %v3048_v35 = vmul.f32 0.125, %v3047_v34 }
 0xd37   :  { %v3052_v36 = vrot.slane %v3048_v35, %v6173_v18 }
 0xd39   :  { %v3053_v37 = vsub.f32 %v3032_v24, %v3052_v36 }
 0xd3b   :  { %v3054_v39 = vmul.f32 %v3053_v37, %v3053_v37 }
 0xd3d   :  { %v3055_v41 = vsel %vm3037_vm11, %v3054_v39, 0.0  ;;  %v3219_v39 = vld [vmem:[%s6724_s14 + $0x1] sm:$0x1] }
 0xd3e   :  { %v3056_v42 = vrot.slane %v3055_v41, 4 }
 0xd40   :  { %v3057_v43 = vadd.f32 %v3056_v42, %v3055_v41 }
 0xd42   :  { %v3058_v45 = vrot.slane %v3057_v43, 2 }
 0xd44   :  { %v3059_v46 = vadd.f32 %v3058_v45, %v3057_v43  ;;  %v4519_v43 = vld [vmem:[%s6724_s14 + $0x2] ss:$0 sm:$0xff] }
 0xd46   :  { %v3060_v48 = vrot.slane %v3059_v46, 1 }
 0xd48   :  { %v3061_v49 = vadd.f32 %v3060_v48, %v3059_v46 }
 0xd4a   :  { %3062 = vrot.lane.b32.xlu1 %v3061_v49, %s5710_s7 }
 0xdbc   :  { %v3063_v54 = vpop.permute.xlu1 %3062 }
 0xdbd   :  { %v3064_v55 = vadd.f32 %v3063_v54, %v3061_v49  ;;  %v6502_v49 = vld [vmem:[%s6725_s15 + $0x4] sm:$0xf]  ;;  %v5483_v54 = vld [vmem:[%s6726_s16 + $0x8] sm:$0xff]  }
 0xdbf   :  { %v3065_v56 = vmul.f32 0.125, %v3064_v55  ;;  %v5484_v55 = vld [vmem:[%s6726_s16 + $0x50] sm:$0xff]  }
 0xdc1   :  { %v3067_v57 = vadd.f32 1e-05, %v3065_v56  ;;  %v5486_v56 = vld [vmem:[%s6726_s16 + $0x10] sm:$0xff]  }
 0xdc3   :  { %5531 = vrsqrt.f32 %v3067_v57  ;;  %v5487_v57 = vld [vmem:[%s6726_s16 + $0x58] sm:$0xff]  }
 0xdcd   :  { %v5532_v59 = vpop.eup %5531 }
 0xdce   :  { %v3069_v60 = vmul.f32 %v5532_v59, %v3066_v58  ;;  %v5489_v58 = vld [vmem:[%s6726_s16 + $0x18] sm:$0xff]   ;;  %v5490_v59 = vld [vmem:[%s6726_s16 + $0x60] sm:$0xff]  }
 0xdd0   :  { %v3073_v61 = vrot.slane %v3069_v60, %v6173_v18  ;;  %v5492_v60 = vld [vmem:[%s6726_s16 + $0x20] sm:$0xff]  }
 0xdd2   :  { %v3074_v63 = vmul.f32 %v3073_v61, %v3053_v37  ;;  %v5493_v61 = vld [vmem:[%s6726_s16 + $0x68] sm:$0xff]  }
 0xdd4   :  { %v6446_v0 = vadd.f32 %v4509_v62, %v3074_v63  ;;  %v5495_v62 = vld [vmem:[%s6726_s16 + $0x28] sm:$0xff]   ;;  %v5496_v63 = vld [vmem:[%s6726_s16 + $0x70] sm:$0xff]  }
 0xdd6   :  { %v3082_v1 = vpack.c.bf16 %v6446_v0, %v6446_v0 }
 0xdd8   :  { %5146 = vmatmul.mubr.bf16.vlgmr.msra.gmra.mrb[40].mxu0 %v3082_v1  ;;  %v5497_v1 = vld [vmem:[%s6726_s16 + $0xa8] sm:$0xff]  }
 0xdd9   :  { %5180 = vmatprep.mubr.msk.bf16.mxu0 %vm5715_vm6, %v5716_v38  ;;  %5165 = vmatpush3.bf16.msra.mxu0 %v5482_v29 }
 0xdda   :  { %5166 = vmatprep.subr.bf16.mxu0 %v5716_v38 }
 0xddd   :  { %5167 = vmatpush3.bf16.msra.mxu0 %v5485_v30 }
 0xdde   :  { %5168 = vmatprep.subr.bf16.mxu0 %v5716_v38 }
 0xde1   :  { %5169 = vmatpush3.bf16.msra.mxu0 %v5488_v31 }
 0xde2   :  { %5170 = vmatprep.subr.bf16.mxu0 %v5716_v38 }
 0xde5   :  { %5171 = vmatpush3.bf16.msra.mxu0 %v5491_v32 }
 0xde6   :  { %5172 = vmatprep.subr.bf16.mxu0 %v5716_v38 }
 0xde9   :  { %5173 = vmatpush3.bf16.msra.mxu0 %v5494_v33 }
 0xdea   :  { %5174 = vmatprep.subr.bf16.mxu0 %v5716_v38 }
 0xded   :  { %5175 = vmatpush3.bf16.msra.mxu0 %v5497_v1  ;;  %v5518_v1 = vld [vmem:[%s6728_s18 + $0x28] sm:$0xff]  }
 0xdee   :  { %5176 = vmatprep.subr.bf16.mxu0 %v5716_v38 }
 0xeab   :  { %v3185_v3 = vpop.f32.mrb[40].mxu0 }
 0xeac   :  { %v3186_v4 = vadd.f32 %v4510_v2, %v3185_v3  ;;  %v5147_v5 = vpop.f32.mrb[41].mxu0  ;;  %v5498_v2 = vld [vmem:[%s6726_s16 + $0x30] sm:$0xff]   ;;  %v5499_v3 = vld [vmem:[%s6726_s16 + $0x78] sm:$0xff]  }
 0xead   :  { %v3188_v6 = vpop.f32.mrb[42].mxu0  ;;  %v5501_v5 = vld [vmem:[%s6726_s16 + $0x38] sm:$0xff]  }
 0xeae   :  { %v3191_v7 = vsel %vm3037_vm11, %v3186_v4, 0.0  ;;  %v5148_v8 = vpop.f32.mrb[43].mxu0  ;;  %v5502_v6 = vld [vmem:[%s6726_s16 + $0xb8] sm:$0xff]  }
 0xeaf   :  { %v3192_v9 = vrot.slane %v3191_v7, 4 }
 0xeb1   :  { %v3193_v10 = vadd.f32 %v3192_v9, %v3191_v7 }
 0xeb3   :  { %v3194_v11 = vrot.slane %v3193_v10, 2 }
 0xeb5   :  { %v3195_v12 = vadd.f32 %v3194_v11, %v3193_v10 }
 0xeb7   :  { %v3196_v13 = vrot.slane %v3195_v12, 1 }
 0xeb9   :  { %v3197_v14 = vadd.f32 %v3196_v13, %v3195_v12 }
 0xebb   :  { %3198 = vrot.lane.b32.xlu0 %v3197_v14, %s5710_s7 }
 0xf2d   :  { %v3199_v15 = vpop.permute.xlu0 %3198 }
 0xf2e   :  { %v3200_v16 = vadd.f32 %v3199_v15, %v3197_v14 }
 0xf30   :  { %v3201_v17 = vmul.f32 0.125, %v3200_v16 }
 0xf32   :  { %v3205_v19 = vrot.slane %v3201_v17, %v6173_v18 }
 0xf34   :  { %v3206_v20 = vsub.f32 %v3186_v4, %v3205_v19  ;;  %v5500_v4 = vld [vmem:[%s6726_s16 + $0xb0] sm:$0xff]   ;;  %v4528_v19 = vld [vmem:[%s6727_s17] ss:$0 sm:$0xff] }
 0xf35   :  { %5177 = vmatpush3.bf16.msra.mxu0 %v5500_v4 }
 0xf36   :  { %v3207_v21 = vmul.f32 %v3206_v20, %v3206_v20  ;;  %5178 = vmatprep.subr.bf16.mxu0 %v5716_v38 }
 0xf38   :  { %v3208_v22 = vsel %vm3037_vm11, %v3207_v21, 0.0 }
 0xf39   :  { %v3209_v23 = vrot.slane %v3208_v22, 4  ;;  %5179 = vmatpush3.bf16.msra.mxu0 %v5502_v6 }
 0xf3b   :  { %v3210_v24 = vadd.f32 %v3209_v23, %v3208_v22 }
 0xf3d   :  { %v3211_v25 = vrot.slane %v3210_v24, 2 }
 0xf3f   :  { %v3212_v26 = vadd.f32 %v3211_v25, %v3210_v24 }
 0xf41   :  { %v3213_v27 = vrot.slane %v3212_v26, 1 }
 0xf43   :  { %v3214_v28 = vadd.f32 %v3213_v27, %v3212_v26 }
 0xf45   :  { %3215 = vrot.lane.b32.xlu1 %v3214_v28, %s5710_s7 }
 0xfb7   :  { %v3216_v34 = vpop.permute.xlu1 %3215 }
 0xfb8   :  { %v3217_v35 = vadd.f32 %v3216_v34, %v3214_v28 }
 0xfba   :  { %v3218_v36 = vmul.f32 0.125, %v3217_v35 }
 0xfbc   :  { %v3220_v37 = vadd.f32 1e-05, %v3218_v36 }
 0xfbe   :  { %5533 = vrsqrt.f32 %v3220_v37 }
 0xfc8   :  { %v5534_v40 = vpop.eup %5533 }
 0xfc9   :  { %v3222_v41 = vmul.f32 %v5534_v40, %v3219_v39 }
 0xfcb   :  { %v3226_v42 = vrot.slane %v3222_v41, %v6173_v18 }
 0xfcd   :  { %v3227_v44 = vmul.f32 %v3226_v42, %v3206_v20 }
 0xfcf   :  { %v3233_v45 = vadd.f32 %v4519_v43, %v3227_v44 }
 0xfd1   :  { %vm3234_vm12 = vcmp.gt.f32.partialorder %v3233_v45, 0.0  ;;  %v3235_v46 = vmul.f32 0.2, %v3233_v45 }
 0xfd3   :  { %v3236_v48 = vsel %vm3234_vm12, %v3233_v45, %v3235_v46 }
 0xfd4   :  { %5150 = vmatpush3.msk.msra.mxu1 %vm3037_vm11, %v3236_v48 }
 0xfd5   :  { %5152 = vmatmul.mubr.msk.f32.vlgmr.msra.gmra.mrb[40].mxu1 %vm3239_vm13, %v6490_v47  ;;  %5154 = vmatprep.subr.mxu1 %v5716_v38 }
 0xfd6   :  { %5155 = vmatpush3.msk.msra.mxu1 %vm3037_vm11, %v3236_v48  ;;  %5156 = vmatprep.mubr.msk.f32.mxu1 %vm5715_vm6, %v5716_v38 }
 0xfd7   :  { %5159 = vmatprep.subr.mxu1 %v5716_v38 }
 0xfd9   :  { %5157 = vmatmul.mubr.msk.f32.vlgmr.msra.gmra.mrb[42].mxu1 %vm3239_vm13, %v6502_v49 }
 0xfda   :  { %5160 = vmatpush3.msk.msra.mxu1 %vm3037_vm11, %v3236_v48  ;;  %5161 = vmatprep.mubr.msk.f32.mxu1 %vm5715_vm6, %v5716_v38 }
 0xfdb   :  { %4881 = vmatprep.subr.bf16.mxu1 %v5479_v50 }
 0xfdd   :  { %5162 = vmatmul.mubr.msk.f32.vlgmr.msra.gmra.mrb[44].mxu1 %vm3239_vm13, %v6516_v51 }
 0xfde   :  { %4882 = vmatpush3.bf16.msra.mxu1 %v5480_v52 }
 0xfdf   :  { %4883 = vmatprep.subr.bf16.mxu1 %v5481_v53  ;;  %v5503_v53 = vld [vmem:[%s6728_s18 + $0x40] sm:$0xff]  }
 0xfe0   :  { %4918 = vmatprep.subr.bf16.mxu0 %v5503_v53 }
 0xfe2   :  { %4884 = vmatpush3.bf16.msra.mxu1 %v5483_v54  ;;  %v5504_v54 = vld [vmem:[%s6728_s18] sm:$0xff]  }
 0xfe3   :  { %4885 = vmatprep.subr.bf16.mxu1 %v5484_v55  ;;  %v5505_v55 = vld [vmem:[%s6728_s18 + $0x48] sm:$0xff]  }
 0xfe6   :  { %4886 = vmatpush3.bf16.msra.mxu1 %v5486_v56  ;;  %v5506_v56 = vld [vmem:[%s6728_s18 + $0x8] sm:$0xff]  }
 0xfe7   :  { %4887 = vmatprep.subr.bf16.mxu1 %v5487_v57  ;;  %v5508_v57 = vld [vmem:[%s6728_s18 + $0x50] sm:$0xff]  }
 0xfea   :  { %4888 = vmatpush3.bf16.msra.mxu1 %v5489_v58  ;;  %v5509_v58 = vld [vmem:[%s6728_s18 + $0x10] sm:$0xff]  }
 0xfeb   :  { %4889 = vmatprep.subr.bf16.mxu1 %v5490_v59  ;;  %v5511_v59 = vld [vmem:[%s6728_s18 + $0x58] sm:$0xff]  }
 0xfee   :  { %4890 = vmatpush3.bf16.msra.mxu1 %v5492_v60  ;;  %v5512_v60 = vld [vmem:[%s6728_s18 + $0x18] sm:$0xff]  }
 0xfef   :  { %4891 = vmatprep.subr.bf16.mxu1 %v5493_v61  ;;  %v5514_v61 = vld [vmem:[%s6728_s18 + $0x60] sm:$0xff]  }
 0xff2   :  { %4892 = vmatpush3.bf16.msra.mxu1 %v5495_v62  ;;  %v5515_v62 = vld [vmem:[%s6728_s18 + $0x20] sm:$0xff]  }
 0xff3   :  { %4893 = vmatprep.subr.bf16.mxu1 %v5496_v63  ;;  %v5517_v63 = vld [vmem:[%s6728_s18 + $0x68] sm:$0xff]  }
 0xff6   :  { %4894 = vmatpush3.bf16.msra.mxu1 %v5498_v2  ;;  %v5520_v2 = vld [vmem:[%s6728_s18 + $0x70] sm:$0xff]  }
 0xff7   :  { %4895 = vmatprep.subr.bf16.mxu1 %v5499_v3  ;;  %v5521_v3 = vld [vmem:[%s6728_s18 + $0x30] sm:$0xff]  }
 0xffa   :  { %4896 = vmatpush3.bf16.msra.mxu1 %v5501_v5 }
 0xffb   :  { %5184 = vmatprep.subr.mxu1 %v5716_v38 }
0x10a8   :  { %v3312_v7 = vpop.f32.mrb[40].mxu1 }
0x10a9   :  { %v5153_v8 = vpop.f32.mrb[41].mxu1  ;;  %v3466_v12 = vpack.c.bf16 %v3312_v7, %v3312_v7 }
0x10aa   :  { %v3773_v8 = vld [vmem:[%s6727_s17 + $0x1] sm:$0x1] }
0x10ac   :  { %v3387_v9 = vpop.f32.mrb[42].mxu1 }
0x10ad   :  { %v3467_v10 = vpack.c.bf16 %v3387_v9, %v3387_v9  ;;  %v5158_v11 = vpop.f32.mrb[43].mxu1 }
0x10af   :  { %3697 = vmatprep.mubr.bf16.mxu1 %v3467_v10 }
0x10b0   :  { %v3462_v13 = vpop.f32.mrb[44].mxu1  ;;  %3698 = vmatmul.mubr.bf16.vlgmr.msra.gmra.mrb[48].mxu1 %v3466_v12  ;;  %v4553_v12 = vld [vmem:[%s6727_s17 + $0x2] ss:$0 sm:$0xff] }
0x10b1   :  { %v3468_v14 = vpack.c.bf16 %v3462_v13, %v3462_v13  ;;  %v5163_v15 = vpop.f32.mrb[45].mxu1  ;;  %5186 = vmatprep.mubr.msk.f32.mxu1 %vm5715_vm6, %v5716_v38 }
0x10b3   :  { %5181 = vmatmul.mubr.bf16.vlgmr.msra.gmra.mrb[44].mxu0 %v3468_v14 }
0x10b4   :  { %4919 = vmatpush3.bf16.msra.mxu0 %v5504_v54 }
0x10b5   :  { %4920 = vmatprep.subr.bf16.mxu0 %v5505_v55 }
0x10b8   :  { %4921 = vmatpush3.bf16.msra.mxu0 %v5506_v56 }
0x10b9   :  { %4922 = vmatprep.subr.bf16.mxu0 %v5508_v57 }
0x10bc   :  { %4923 = vmatpush3.bf16.msra.mxu0 %v5509_v58 }
0x10bd   :  { %4924 = vmatprep.subr.bf16.mxu0 %v5511_v59 }
0x10c0   :  { %4925 = vmatpush3.bf16.msra.mxu0 %v5512_v60 }
0x10c1   :  { %4926 = vmatprep.subr.bf16.mxu0 %v5514_v61 }
0x10c4   :  { %4927 = vmatpush3.bf16.msra.mxu0 %v5515_v62 }
0x10c5   :  { %4928 = vmatprep.subr.bf16.mxu0 %v5517_v63 }
0x10c8   :  { %4929 = vmatpush3.bf16.msra.mxu0 %v5518_v1 }
0x10c9   :  { %4930 = vmatprep.subr.bf16.mxu0 %v5520_v2 }
0x10cc   :  { %4931 = vmatpush3.bf16.msra.mxu0 %v5521_v3 }
0x1183   :  { %v4897_v16 = vpop.f32.mrb[48].mxu1 }
0x1184   :  { %v4898_v17 = vpop.f32.mrb[49].mxu1 }
0x1185   :  { %v4899_v20 = vadd.f32 %v4898_v17, %v4897_v16  ;;  %v4900_v21 = vpop.f32.mrb[50].mxu1  ;;  %v5510_v17 = vld [vmem:[%s6728_s18 + $0x88] sm:$0xff]  }
0x1186   :  { %v4901_v22 = vpop.f32.mrb[51].mxu1  ;;  %v3739_v23 = vpop.f32.mrb[44].mxu0  ;;  %v5523_v21 = vld [vmem:[%s6728_s18 + $0x78] sm:$0xff]  }
0x1187   :  { %v3700_v24 = vadd.f32 %v4899_v20, %v4528_v19  ;;  %v5182_v25 = vpop.f32.mrb[45].mxu0  ;;  %v5519_v19 = vld [vmem:[%s6728_s18 + $0xa0] sm:$0xff]   ;;  %v5522_v20 = vld [vmem:[%s6728_s18 + $0xa8] sm:$0xff]   ;;  %v5525_v22 = vld [vmem:[%s6728_s18 + $0xb0] sm:$0xff]   ;;  %4932 = vmatprep.subr.bf16.mxu0 %v5523_v21 }
0x1188   :  { %v3742_v26 = vpop.f32.mrb[46].mxu0 }
0x1189   :  { %v3740_v27 = vadd.f32 %v3739_v23, %v3700_v24  ;;  %v5183_v28 = vpop.f32.mrb[47].mxu0  ;;  %v5524_v23 = vld [vmem:[%s6728_s18 + $0x38] sm:$0xff]  }
0x118a   :  { %4933 = vmatpush3.bf16.msra.mxu0 %v5524_v23  ;;  %v5526_v24 = vld [vmem:[%s6728_s18 + $0xb8] sm:$0xff]  }
0x118b   :  { %v3745_v29 = vsel %vm3037_vm11, %v3740_v27, 0.0 }
0x118c   :  { %v3746_v30 = vrot.slane %v3745_v29, 4 }
0x118e   :  { %v3747_v31 = vadd.f32 %v3746_v30, %v3745_v29 }
0x1190   :  { %v3748_v32 = vrot.slane %v3747_v31, 2 }
0x1192   :  { %v3749_v33 = vadd.f32 %v3748_v32, %v3747_v31 }
0x1194   :  { %v3750_v34 = vrot.slane %v3749_v33, 1 }
0x1196   :  { %v3751_v35 = vadd.f32 %v3750_v34, %v3749_v33 }
0x1198   :  { %3752 = vrot.lane.b32.xlu0 %v3751_v35, %s5710_s7 }
0x120a   :  { %v3753_v36 = vpop.permute.xlu0 %3752 }
0x120b   :  { %v3754_v37 = vadd.f32 %v3753_v36, %v3751_v35 }
0x120d   :  { %v3755_v39 = vmul.f32 0.125, %v3754_v37 }
0x120f   :  { %v3759_v40 = vrot.slane %v3755_v39, %v6173_v18 }
0x1211   :  { %v3760_v41 = vsub.f32 %v3740_v27, %v3759_v40 }
0x1213   :  { %v3761_v42 = vmul.f32 %v3760_v41, %v3760_v41 }
0x1215   :  { %v3762_v43 = vsel %vm3037_vm11, %v3761_v42, 0.0 }
0x1216   :  { %v3763_v44 = vrot.slane %v3762_v43, 4 }
0x1218   :  { %v3764_v45 = vadd.f32 %v3763_v44, %v3762_v43 }
0x121a   :  { %v3765_v46 = vrot.slane %v3764_v45, 2 }
0x121c   :  { %v3766_v48 = vadd.f32 %v3765_v46, %v3764_v45 }
0x121e   :  { %v3767_v50 = vrot.slane %v3766_v48, 1 }
0x1220   :  { %v3768_v52 = vadd.f32 %v3767_v50, %v3766_v48 }
0x1222   :  { %3769 = vrot.lane.b32.xlu1 %v3768_v52, %s5710_s7 }
0x1294   :  { %v3770_v4 = vpop.permute.xlu1 %3769 }
0x1295   :  { %v3771_v5 = vadd.f32 %v3770_v4, %v3768_v52 }
0x1297   :  { %v3772_v6 = vmul.f32 0.125, %v3771_v5 }
0x1299   :  { %v3774_v7 = vadd.f32 1e-05, %v3772_v6 }
0x129b   :  { %5535 = vrsqrt.f32 %v3774_v7 }
0x12a5   :  { %v5536_v9 = vpop.eup %5535 }
0x12a6   :  { %v3776_v10 = vmul.f32 %v5536_v9, %v3773_v8 }
0x12a8   :  { %v3780_v11 = vrot.slane %v3776_v10, %v6173_v18  ;;  %v4312_v10 = vld [vmem:[%s6729_s19 + $0x1] sm:$0x1] }
0x12aa   :  { %v3781_v13 = vmul.f32 %v3780_v11, %v3760_v41 }
0x12ac   :  { %v3787_v14 = vadd.f32 %v4553_v12, %v3781_v13 }
0x12ae   :  { %vm3788_vm14 = vcmp.gt.f32.partialorder %v3787_v14, 0.0  ;;  %v3789_v15 = vmul.f32 0.2, %v3787_v14 }
0x12b0   :  { %v3790_v16 = vsel %vm3788_vm14, %v3787_v14, %v3789_v15  ;;  %v4585_v14 = vld [vmem:[%s6729_s19 + $0x2] ss:$0 sm:$0xff] }
0x12b1   :  { %5185 = vmatpush3.msk.msra.mxu1 %vm3037_vm11, %v3790_v16 }
0x12b2   :  { %5187 = vmatmul.mubr.msk.f32.vlgmr.msra.gmra.mrb[46].mxu1 %vm3239_vm13, %v6490_v47  ;;  %5189 = vmatprep.subr.mxu1 %v5716_v38  ;;  %v5507_v47 = vld [vmem:[%s6728_s18 + $0x80] sm:$0xff]  }
0x12b3   :  { %5190 = vmatpush3.msk.msra.mxu1 %vm3037_vm11, %v3790_v16  ;;  %5191 = vmatprep.mubr.msk.f32.mxu1 %vm5715_vm6, %v5716_v38 }
0x12b4   :  { %5194 = vmatprep.subr.mxu1 %v5716_v38 }
0x12b6   :  { %5192 = vmatmul.mubr.msk.f32.vlgmr.msra.gmra.mrb[52].mxu1 %vm3239_vm13, %v6502_v49  ;;  %v5513_v49 = vld [vmem:[%s6728_s18 + $0x90] sm:$0xff]  }
0x12b7   :  { %5195 = vmatpush3.msk.msra.mxu1 %vm3037_vm11, %v3790_v16  ;;  %5196 = vmatprep.mubr.msk.f32.mxu1 %vm5715_vm6, %v5716_v38 }
0x12b8   :  { %5199 = vmatprep.subr.bf16.mxu1 %v5716_v38 }
0x12ba   :  { %5197 = vmatmul.mubr.msk.f32.vlgmr.msra.gmra.mrb[54].mxu1 %vm3239_vm13, %v6516_v51  ;;  %v5516_v51 = vld [vmem:[%s6728_s18 + $0x98] sm:$0xff]  }
0x12bb   :  { %5200 = vmatpush3.bf16.msra.mxu1 %v5507_v47  ;;  %5215 = vmatprep.mubr.msk.bf16.mxu1 %vm5715_vm6, %v5716_v38 }
0x12bc   :  { %5201 = vmatprep.subr.bf16.mxu1 %v5716_v38 }
0x12bf   :  { %5202 = vmatpush3.bf16.msra.mxu1 %v5510_v17 }
0x12c0   :  { %5203 = vmatprep.subr.bf16.mxu1 %v5716_v38 }
0x12c3   :  { %5204 = vmatpush3.bf16.msra.mxu1 %v5513_v49 }
0x12c4   :  { %5205 = vmatprep.subr.bf16.mxu1 %v5716_v38 }
0x12c7   :  { %5206 = vmatpush3.bf16.msra.mxu1 %v5516_v51 }
0x12c8   :  { %5207 = vmatprep.subr.bf16.mxu1 %v5716_v38 }
0x12cb   :  { %5208 = vmatpush3.bf16.msra.mxu1 %v5519_v19 }
0x12cc   :  { %5209 = vmatprep.subr.bf16.mxu1 %v5716_v38 }
0x12cf   :  { %5210 = vmatpush3.bf16.msra.mxu1 %v5522_v20 }
0x12d0   :  { %5211 = vmatprep.subr.bf16.mxu1 %v5716_v38 }
0x12d3   :  { %5212 = vmatpush3.bf16.msra.mxu1 %v5525_v22 }
0x12d4   :  { %5213 = vmatprep.subr.bf16.mxu1 %v5716_v38  ;;  %v4560_v38 = vld [vmem:[%s6729_s19] ss:$0 sm:$0xff] }
0x12d7   :  { %5214 = vmatpush3.bf16.msra.mxu1 %v5526_v24 }
0x1385   :  { %v3861_v25 = vpop.f32.mrb[46].mxu1 }
0x1386   :  { %v5188_v26 = vpop.f32.mrb[47].mxu1  ;;  %v4005_v30 = vpack.c.bf16 %v3861_v25, %v3861_v25 }
0x1389   :  { %v3931_v27 = vpop.f32.mrb[52].mxu1 }
0x138a   :  { %v4006_v28 = vpack.c.bf16 %v3931_v27, %v3931_v27  ;;  %v5193_v29 = vpop.f32.mrb[53].mxu1 }
0x138c   :  { %4236 = vmatprep.mubr.bf16.mxu0 %v4006_v28 }
0x138d   :  { %4237 = vmatmul.mubr.bf16.vlgmr.msra.gmra.mrb[48].mxu0 %v4005_v30  ;;  %v4001_v31 = vpop.f32.mrb[54].mxu1 }
0x138e   :  { %v4007_v32 = vpack.c.bf16 %v4001_v31, %v4001_v31  ;;  %v5198_v33 = vpop.f32.mrb[55].mxu1 }
0x1390   :  { %5216 = vmatmul.mubr.bf16.vlgmr.msra.gmra.mrb[56].mxu1 %v4007_v32 }
0x1460   :  { %v4934_v34 = vpop.f32.mrb[48].mxu0 }
0x1461   :  { %v4935_v35 = vpop.f32.mrb[49].mxu0 }
0x1462   :  { %v4936_v36 = vadd.f32 %v4935_v35, %v4934_v34  ;;  %v4937_v37 = vpop.f32.mrb[50].mxu0 }
0x1463   :  { %v4938_v39 = vpop.f32.mrb[51].mxu0  ;;  %v4278_v40 = vpop.f32.mrb[56].mxu1 }
0x1464   :  { %v4239_v41 = vadd.f32 %v4936_v36, %v4560_v38  ;;  %v5217_v42 = vpop.f32.mrb[57].mxu1 }
0x1465   :  { %v4281_v43 = vpop.f32.mrb[58].mxu1 }
0x1466   :  { %v4279_v44 = vadd.f32 %v4278_v40, %v4239_v41  ;;  %v5218_v45 = vpop.f32.mrb[59].mxu1 }
0x1468   :  { %v4284_v46 = vsel %vm3037_vm11, %v4279_v44, 0.0 }
0x1469   :  { %v4285_v48 = vrot.slane %v4284_v46, 4 }
0x146b   :  { %v4286_v50 = vadd.f32 %v4285_v48, %v4284_v46 }
0x146d   :  { %v4287_v52 = vrot.slane %v4286_v50, 2 }
0x146f   :  { %v4288_v53 = vadd.f32 %v4287_v52, %v4286_v50 }
0x1471   :  { %v4289_v54 = vrot.slane %v4288_v53, 1 }
0x1473   :  { %v4290_v55 = vadd.f32 %v4289_v54, %v4288_v53 }
0x1475   :  { %4291 = vrot.lane.b32.xlu0 %v4290_v55, %s5710_s7 }
0x14e7   :  { %v4292_v56 = vpop.permute.xlu0 %4291 }
0x14e8   :  { %v4293_v57 = vadd.f32 %v4292_v56, %v4290_v55 }
0x14ea   :  { %v4294_v58 = vmul.f32 0.125, %v4293_v57 }
0x14ec   :  { %v4298_v59 = vrot.slane %v4294_v58, %v6173_v18 }
0x14ee   :  { %v4299_v60 = vsub.f32 %v4279_v44, %v4298_v59 }
0x14f0   :  { %v4300_v61 = vmul.f32 %v4299_v60, %v4299_v60 }
0x14f2   :  { %v4301_v62 = vsel %vm3037_vm11, %v4300_v61, 0.0 }
0x14f3   :  { %v4302_v63 = vrot.slane %v4301_v62, 4 }
0x14f5   :  { %v4303_v1 = vadd.f32 %v4302_v63, %v4301_v62 }
0x14f7   :  { %v4304_v2 = vrot.slane %v4303_v1, 2 }
0x14f9   :  { %v4305_v3 = vadd.f32 %v4304_v2, %v4303_v1 }
0x14fb   :  { %v4306_v4 = vrot.slane %v4305_v3, 1 }
0x14fd   :  { %v4307_v5 = vadd.f32 %v4306_v4, %v4305_v3 }
0x14ff   :  { %4308 = vrot.lane.b32.xlu1 %v4307_v5, %s5710_s7 }
0x1571   :  { %v4309_v6 = vpop.permute.xlu1 %4308 }
0x1572   :  { %v4310_v7 = vadd.f32 %v4309_v6, %v4307_v5 }
0x1574   :  { %v4311_v8 = vmul.f32 0.125, %v4310_v7 }
0x1576   :  { %v4313_v9 = vadd.f32 1e-05, %v4311_v8 }
0x1578   :  { %5537 = vrsqrt.f32 %v4313_v9 }
0x1582   :  { %v5538_v11 = vpop.eup %5537 }
0x1583   :  { %v4315_v12 = vmul.f32 %v5538_v11, %v4312_v10 }
0x1585   :  { %v4319_v13 = vrot.slane %v4315_v12, %v6173_v18 }
0x1587   :  { %v4320_v15 = vmul.f32 %v4319_v13, %v4299_v60 }
0x1589   :  { %v4326_v16 = vadd.f32 %v4585_v14, %v4320_v15 }
0x158b   :  { %v4327_v47 = vadd.f32 %v4326_v16, %v6446_v0 }
0x158d   :  { %vm4328_vm15 = vcmp.gt.f32.partialorder %v4327_v47, 0.0  ;;  %v4329_v17 = vmul.f32 0.2, %v4327_v47 }
0x158f   :  { %v4330_v49 = vsel %vm4328_vm15, %v4327_v47, %v4329_v17 }
0x1590   :  { %4331 = vst [vmem:[%s6747_s8] sm:$0xf] %v4330_v49 }
0x1591   :  { %4336 = vsyncpa [#allocation3], 1 }
0x1592   :  { %4337 = vsyncpa [#allocation5], 1 }
0x1593   :  { %4338 = vsyncpa [#allocation8], 1 }
0x1594   :  { %4339 = vsyncpa [#allocation11], 1 }

</bundles_post_ra>
